<compile_context>
chip_gen: v6e
topology: v6e:2x2x1
jax: 0.10.0
libtpu: 0.0.40
codegen_flags: <defaults>
</compile_context>

<pallas_src>
import functools
import math

import jax
import jax.numpy as jnp
from jax.experimental import pallas as pl
from jax.experimental.pallas import tpu as pltpu


def _comp_attn_kernel(x_ref, a_ref, wq_ref, wk_ref, wv_ref, wscbd_ref, e_ref,
                      wm_ref, o_ref, *, n_heads, n_rules, proj, block_batch,
                      n_read, n_write):
    BB, T, Tw, R, P = block_batch, n_read, n_write, n_rules, proj
    M = BB * T

    x = x_ref[...].astype(jnp.bfloat16)        # (M,  S) rows of curr_state
    a = a_ref[...].astype(jnp.bfloat16)        # (Mw, S) rows of attend_to

    # Shared value projection (same for every head): (Mw, R*P)
    v2 = jnp.dot(a, wv_ref[...], preferred_element_type=jnp.float32)
    v3 = v2.reshape(BB, Tw, R * P).astype(jnp.bfloat16)

    wsc_bd = wscbd_ref[...]                    # (R*P, R) block-diag score weights (f32)
    e_mat = e_ref[...]                         # (R, R*P) rule->lane expander (f32)

    out_acc = jnp.zeros(o_ref.shape, jnp.float32)   # (M, S_pad)

    for h in range(n_heads):
        # Per-head projections; 1/sqrt(P) already folded into Wq.
        qh = jnp.dot(x, wq_ref[h], preferred_element_type=jnp.float32)    # (M,  P)
        kh = jnp.dot(a, wk_ref[h], preferred_element_type=jnp.float32)    # (Mw, P)
        q3 = qh.reshape(BB, T, P).astype(jnp.bfloat16)
        k3 = kh.reshape(BB, Tw, P).astype(jnp.bfloat16)

        # Attention softmax (per batch element inside the block).
        logits = jnp.einsum('btp,bwp->btw', q3, k3,
                            preferred_element_type=jnp.float32)           # (BB,T,Tw)
        m = jnp.max(logits, axis=-1, keepdims=True)
        pexp = jnp.exp(logits - m)
        denom = jnp.sum(pexp, axis=-1, keepdims=True)
        score = (pexp * pl.reciprocal(denom, approx=True)).astype(jnp.bfloat16)

        # All rules in one MXU call: (BB, T, R*P)
        o3 = jnp.einsum('btw,bwn->btn', score, v3,
                        preferred_element_type=jnp.float32)
        o2 = o3.reshape(M, R * P)                                          # f32

        # Compositional (rule) softmax.  The q_v term and the score-net bias are
        # constant over rules and cancel here, so they are omitted.
        cl = jnp.dot(o2, wsc_bd, preferred_element_type=jnp.float32)       # (M, R)
        cm = jnp.max(cl, axis=-1, keepdims=True)
        ce = jnp.exp(cl - cm)
        cd = jnp.sum(ce, axis=-1, keepdims=True)
        cs = ce * pl.reciprocal(cd, approx=True)                           # (M, R)

        # Expand rule weights across the P lanes of each rule and mix.
        c_exp = jnp.dot(cs, e_mat, preferred_element_type=jnp.float32)     # (M, R*P)
        weighted = (c_exp * o2).astype(jnp.bfloat16)

        # Rule-sum + multi-head merge fused into replicated per-head merge weights.
        out_acc = out_acc + jnp.dot(weighted, wm_ref[h],
                                    preferred_element_type=jnp.float32)    # (M, S_pad)

    o_ref[...] = out_acc


def prepare_params(params, *, state_size, n_heads, n_rules, lane_pad=128):
    """One-time weight transforms for the kernel (do NOT call per forward)."""
    S, H, R = state_size, n_heads, n_rules
    P = S // H
    scale = 1.0 / math.sqrt(P)
    S_pad = ((S + lane_pad - 1) // lane_pad) * lane_pad

    wq_h = (params["wq"] * scale).reshape(S, H, P).transpose(1, 0, 2).astype(jnp.bfloat16)
    wk_h = params["wk"].reshape(S, H, P).transpose(1, 0, 2).astype(jnp.bfloat16)
    wv_b = params["wv"].astype(jnp.bfloat16)                              # (S, R*P)

    wsc_vec = params["wsc_out"][0]                                        # (P,)
    wsc_bd = jnp.kron(jnp.eye(R, dtype=jnp.float32),
                      wsc_vec.reshape(P, 1).astype(jnp.float32))          # (R*P, R)
    e_mat = jnp.kron(jnp.eye(R, dtype=jnp.float32),
                     jnp.ones((1, P), jnp.float32))                       # (R, R*P)

    wm_rep = jnp.tile(params["wm"].reshape(H, P, S), (1, R, 1))           # (H, R*P, S)
    if S_pad != S:
        wm_rep = jnp.pad(wm_rep, ((0, 0), (0, 0), (0, S_pad - S)))
    wm_rep = wm_rep.astype(jnp.bfloat16)

    return dict(wq_h=wq_h, wk_h=wk_h, wv=wv_b, wsc_bd=wsc_bd, e_mat=e_mat,
                wm_rep=wm_rep)


def compositional_attention(curr_state, attend_to, prep, *, n_heads, n_rules,
                            block_batch=None):
    B, T, S = curr_state.shape
    _, Tw, _ = attend_to.shape
    assert S % n_heads == 0
    H, R = n_heads, n_rules
    P = S // H
    S_pad = prep["wm_rep"].shape[-1]

    if block_batch is None:
        # Largest divisor of B that keeps ~<=512 rows per grid step.
        max_bb = max(1, 512 // max(T, Tw))
        block_batch = 1
        for d in range(1, B + 1):
            if d <= max_bb and B % d == 0:
                block_batch = d
    assert B % block_batch == 0
    BB = block_batch

    x2 = curr_state.reshape(B * T, S)
    a2 = attend_to.reshape(B * Tw, S)

    kernel = functools.partial(
        _comp_attn_kernel, n_heads=H, n_rules=R, proj=P, block_batch=BB,
        n_read=T, n_write=Tw)

    out2 = pl.pallas_call(
        kernel,
        out_shape=jax.ShapeDtypeStruct((B * T, S_pad), jnp.float32),
        grid_spec=pltpu.PrefetchScalarGridSpec(
            num_scalar_prefetch=0,
            grid=(B // BB,),
            in_specs=[
                pl.BlockSpec((BB * T, S), lambda b: (b, 0)),        # curr_state rows
                pl.BlockSpec((BB * Tw, S), lambda b: (b, 0)),       # attend_to rows
                pl.BlockSpec((H, S, P), lambda b: (0, 0, 0)),       # Wq (per-head, scaled)
                pl.BlockSpec((H, S, P), lambda b: (0, 0, 0)),       # Wk (per-head)
                pl.BlockSpec((S, R * P), lambda b: (0, 0)),         # Wv
                pl.BlockSpec((R * P, R), lambda b: (0, 0)),         # block-diag score W
                pl.BlockSpec((R, R * P), lambda b: (0, 0)),         # rule expander
                pl.BlockSpec((H, R * P, S_pad), lambda b: (0, 0, 0)),  # replicated merge W
            ],
            out_specs=pl.BlockSpec((BB * T, S_pad), lambda b: (b, 0)),
        ),
        compiler_params=pltpu.CompilerParams(
            dimension_semantics=("parallel",)),
    )(x2, a2, prep["wq_h"], prep["wk_h"], prep["wv"], prep["wsc_bd"],
      prep["e_mat"], prep["wm_rep"])

    out = out2.reshape(B, T, S_pad)
    if S_pad != S:
        out = out[..., :S]
    return out


def init_params(key, state_size, n_heads, n_rules, qk_dim):
    """Deterministic xavier-uniform init, (in_features, out_features) layout."""
    S, H, R, QK = state_size, n_heads, n_rules, qk_dim
    P = S // H
    ks = jax.random.split(key, 8)

    def xavier(k, fan_in, fan_out):
        bound = math.sqrt(6.0 / (fan_in + fan_out))
        return jax.random.uniform(k, (fan_in, fan_out), jnp.float32, -bound, bound)

    wq = xavier(ks[0], S, H * P)               # query_net (no bias)
    wk = xavier(ks[1], S, H * P)               # key_net (no bias)
    wv = xavier(ks[2], S, R * P)               # value_net (no bias)
    wqv = xavier(ks[3], S, H * QK)             # query_value_net weight
    bqv = jax.random.uniform(ks[4], (1, H * QK), jnp.float32,
                             -1.0 / math.sqrt(S), 1.0 / math.sqrt(S))
    wsc = xavier(ks[5], QK + P, 1)             # score_network weight
    wsc_qv = wsc[:QK].T                        # (1, QK)
    wsc_out = wsc[QK:].T                       # (1, P)
    bsc = jax.random.uniform(ks[6], (1, 1), jnp.float32,
                             -1.0 / math.sqrt(QK + P), 1.0 / math.sqrt(QK + P))
    wm = xavier(ks[7], S, S)                   # multi_head_merge (no bias)

    return dict(wq=wq, wk=wk, wv=wv, wqv=wqv, bqv=bqv,
                wsc_qv=wsc_qv, wsc_out=wsc_out, bsc=bsc, wm=wm)


def reference_forward(curr_state, attend_to, params, *, n_heads, n_rules, qk_dim):
    """Pure-JAX mirror of the PyTorch forward (dot=False), incl. q_v path."""
    B, T, S = curr_state.shape
    _, Tw, _ = attend_to.shape
    H, R, QK = n_heads, n_rules, qk_dim
    P = S // H
    scale = 1.0 / math.sqrt(P)

    q = (curr_state @ params["wq"]).reshape(B, T, H, P).transpose(0, 2, 1, 3) * scale
    k = (attend_to @ params["wk"]).reshape(B, Tw, H, P).transpose(0, 2, 3, 1)
    v = (attend_to @ params["wv"]).reshape(B, Tw, R, P).transpose(0, 2, 1, 3)[:, None]

    score = jax.nn.softmax(q @ k, axis=-1)[:, :, None]       # (B,H,1,T,Tw)
    out = score @ v                                          # (B,H,R,T,P)
    out = out.transpose(0, 3, 1, 2, 4)                       # (B,T,H,R,P)

    q_v = (curr_state @ params["wqv"] + params["bqv"]).reshape(B, T, H, 1, QK)
    q_v = jnp.broadcast_to(q_v, (B, T, H, R, QK))
    inp = jnp.concatenate([q_v, out], axis=-1)
    wsc_full = jnp.concatenate([params["wsc_qv"][0], params["wsc_out"][0]])
    comp_logits = inp @ wsc_full + params["bsc"][0, 0]
    comp_score = jax.nn.softmax(comp_logits, axis=3)[..., None]

    mixed = (comp_score * out).sum(axis=3).reshape(B, T, S)
    return mixed @ params["wm"]


if __name__ == "__main__":
    B, N_READ, N_WRITE = 2, 8, 8
    STATE, HEADS, RULES, QK = 32, 4, 2, 16

    key = jax.random.PRNGKey(0)
    k_params, k_x, k_a = jax.random.split(key, 3)

    params = init_params(k_params, STATE, HEADS, RULES, QK)
    prep = prepare_params(params, state_size=STATE, n_heads=HEADS, n_rules=RULES)

    curr_state = jax.random.normal(k_x, (B, N_READ, STATE), jnp.float32)
    attend_to = jax.random.normal(k_a, (B, N_WRITE, STATE), jnp.float32)

    out = compositional_attention(curr_state, attend_to, prep,
                                  n_heads=HEADS, n_rules=RULES)
    out = jax.block_until_ready(out)

    ref = reference_forward(curr_state, attend_to, params,
                            n_heads=HEADS, n_rules=RULES, qk_dim=QK)
    assert out.shape == (B, N_READ, STATE)
    max_err = float(jnp.max(jnp.abs(out - ref)))
    # bf16 MXU operands + approx reciprocal -> relaxed tolerance vs f32 reference.
    assert jnp.allclose(out, ref, rtol=5e-2, atol=5e-2), max_err

    print("KERNEL_OK")
</pallas_src>

<mosaic_0001>
module attributes {stable_mosaic.version = 11 : i64} {
  func.func @_comp_attn_kernel(%arg0: i32, %arg1: memref<16x32xf32, #tpu.memory_space<vmem>>, %arg2: memref<16x32xf32, #tpu.memory_space<vmem>>, %arg3: memref<4x32x8xbf16, #tpu.memory_space<vmem>>, %arg4: memref<4x32x8xbf16, #tpu.memory_space<vmem>>, %arg5: memref<32x16xbf16, #tpu.memory_space<vmem>>, %arg6: memref<16x2xf32, #tpu.memory_space<vmem>>, %arg7: memref<2x16xf32, #tpu.memory_space<vmem>>, %arg8: memref<4x16x128xbf16, #tpu.memory_space<vmem>>, %arg9: memref<16x128xf32, #tpu.memory_space<vmem>>) attributes {dimension_semantics = [#tpu.dimension_semantics<parallel>], iteration_bounds = array<i64: 1>, scalar_prefetch = 0 : i64, scratch_operands = 0 : i64, tpu.core_type = #tpu.core_type<tc>, window_params = [{transform_indices = @transform_0, window_bounds = array<i64: 16, 32>}, {transform_indices = @transform_1, window_bounds = array<i64: 16, 32>}, {pipeline_mode = #tpu.pipeline_mode<synchronous>, transform_indices = @transform_2, window_bounds = array<i64: 4, 32, 8>}, {pipeline_mode = #tpu.pipeline_mode<synchronous>, transform_indices = @transform_3, window_bounds = array<i64: 4, 32, 8>}, {pipeline_mode = #tpu.pipeline_mode<synchronous>, transform_indices = @transform_4, window_bounds = array<i64: 32, 16>}, {pipeline_mode = #tpu.pipeline_mode<synchronous>, transform_indices = @transform_5, window_bounds = array<i64: 16, 2>}, {pipeline_mode = #tpu.pipeline_mode<synchronous>, transform_indices = @transform_6, window_bounds = array<i64: 2, 16>}, {pipeline_mode = #tpu.pipeline_mode<synchronous>, transform_indices = @transform_7, window_bounds = array<i64: 4, 16, 128>}, {transform_indices = @transform_8, window_bounds = array<i64: 16, 128>}]} {
    %c0 = arith.constant 0 : index
    %c0_0 = arith.constant 0 : index
    %0 = vector.load %arg1[%c0, %c0_0] : memref<16x32xf32, #tpu.memory_space<vmem>>, vector<16x32xf32>
    %1 = arith.truncf %0 : vector<16x32xf32> to vector<16x32xbf16>
    %c0_1 = arith.constant 0 : index
    %c0_2 = arith.constant 0 : index
    %2 = vector.load %arg2[%c0_1, %c0_2] : memref<16x32xf32, #tpu.memory_space<vmem>>, vector<16x32xf32>
    %3 = arith.truncf %2 : vector<16x32xf32> to vector<16x32xbf16>
    %c0_3 = arith.constant 0 : index
    %c0_4 = arith.constant 0 : index
    %4 = vector.load %arg5[%c0_3, %c0_4] : memref<32x16xbf16, #tpu.memory_space<vmem>>, vector<32x16xbf16>
    %cst = arith.constant dense<0.000000e+00> : vector<16x16xf32>
    %5 = tpu.matmul %3, %4, %cst {dimension_numbers = #tpu.dot_dimension_numbers<[1], [0], [0], [1], [0, 0, 1, 1], [], []>} : vector<16x32xbf16>, vector<32x16xbf16>, vector<16x16xf32> -> vector<16x16xf32>
    %6 = vector.shape_cast %5 : vector<16x16xf32> to vector<2x8x16xf32>
    %7 = arith.truncf %6 : vector<2x8x16xf32> to vector<2x8x16xbf16>
    %c0_5 = arith.constant 0 : index
    %c0_6 = arith.constant 0 : index
    %8 = vector.load %arg6[%c0_5, %c0_6] : memref<16x2xf32, #tpu.memory_space<vmem>>, vector<16x2xf32>
    %c0_7 = arith.constant 0 : index
    %c0_8 = arith.constant 0 : index
    %9 = vector.load %arg7[%c0_7, %c0_8] : memref<2x16xf32, #tpu.memory_space<vmem>>, vector<2x16xf32>
    %cst_9 = arith.constant 0.000000e+00 : f32
    %10 = vector.broadcast %cst_9 : f32 to vector<16x128xf32>
    %c0_10 = arith.constant 0 : index
    %c0_11 = arith.constant 0 : index
    %c0_12 = arith.constant 0 : index
    %11 = vector.load %arg3[%c0_10, %c0_11, %c0_12] : memref<4x32x8xbf16, #tpu.memory_space<vmem>>, vector<1x32x8xbf16>
    %12 = vector.shape_cast %11 : vector<1x32x8xbf16> to vector<32x8xbf16>
    %cst_13 = arith.constant dense<0.000000e+00> : vector<16x8xf32>
    %13 = tpu.matmul %1, %12, %cst_13 {dimension_numbers = #tpu.dot_dimension_numbers<[1], [0], [0], [1], [0, 0, 1, 1], [], []>} : vector<16x32xbf16>, vector<32x8xbf16>, vector<16x8xf32> -> vector<16x8xf32>
    %c0_14 = arith.constant 0 : index
    %c0_15 = arith.constant 0 : index
    %c0_16 = arith.constant 0 : index
    %14 = vector.load %arg4[%c0_14, %c0_15, %c0_16] : memref<4x32x8xbf16, #tpu.memory_space<vmem>>, vector<1x32x8xbf16>
    %15 = vector.shape_cast %14 : vector<1x32x8xbf16> to vector<32x8xbf16>
    %cst_17 = arith.constant dense<0.000000e+00> : vector<16x8xf32>
    %16 = tpu.matmul %3, %15, %cst_17 {dimension_numbers = #tpu.dot_dimension_numbers<[1], [0], [0], [1], [0, 0, 1, 1], [], []>} : vector<16x32xbf16>, vector<32x8xbf16>, vector<16x8xf32> -> vector<16x8xf32>
    %17 = vector.shape_cast %13 : vector<16x8xf32> to vector<2x8x8xf32>
    %18 = arith.truncf %17 : vector<2x8x8xf32> to vector<2x8x8xbf16>
    %19 = vector.shape_cast %16 : vector<16x8xf32> to vector<2x8x8xf32>
    %20 = arith.truncf %19 : vector<2x8x8xf32> to vector<2x8x8xbf16>
    "tpu.trace_start"() <{level = 10 : i32, message = "btp,bwp->btw"}> : () -> ()
    %cst_18 = arith.constant dense<0.000000e+00> : vector<2x8x8xf32>
    %21 = tpu.matmul %18, %20, %cst_18 {dimension_numbers = #tpu.dot_dimension_numbers<[2], [2], [1], [1], [0, 0, 0, 1, 1, 1], [0], [0]>} : vector<2x8x8xbf16>, vector<2x8x8xbf16>, vector<2x8x8xf32> -> vector<2x8x8xf32>
    "tpu.trace_stop"() : () -> ()
    %cst_19 = arith.constant dense<0xFF800000> : vector<2x8xf32>
    %22 = vector.multi_reduction <maximumf>, %21, %cst_19 [2] : vector<2x8x8xf32> to vector<2x8xf32>
    %23 = vector.shape_cast %22 : vector<2x8xf32> to vector<2x8x1xf32>
    %24 = vector.broadcast %23 : vector<2x8x1xf32> to vector<2x8x8xf32>
    %25 = arith.subf %21, %24 : vector<2x8x8xf32>
    %26 = math.exp %25 : vector<2x8x8xf32>
    %cst_20 = arith.constant dense<0.000000e+00> : vector<2x8xf32>
    %27 = vector.multi_reduction <add>, %26, %cst_20 [2] : vector<2x8x8xf32> to vector<2x8xf32>
    %28 = vector.shape_cast %27 : vector<2x8xf32> to vector<2x8x1xf32>
    %29 = tpu.reciprocal %28 {approx = true} : vector<2x8x1xf32> -> vector<2x8x1xf32>
    %30 = vector.broadcast %29 : vector<2x8x1xf32> to vector<2x8x8xf32>
    %31 = arith.mulf %26, %30 : vector<2x8x8xf32>
    %32 = arith.truncf %31 : vector<2x8x8xf32> to vector<2x8x8xbf16>
    "tpu.trace_start"() <{level = 10 : i32, message = "btw,bwn->btn"}> : () -> ()
    %cst_21 = arith.constant dense<0.000000e+00> : vector<2x8x16xf32>
    %33 = tpu.matmul %32, %7, %cst_21 {dimension_numbers = #tpu.dot_dimension_numbers<[2], [1], [1], [2], [0, 0, 0, 1, 1, 2], [0], [0]>} : vector<2x8x8xbf16>, vector<2x8x16xbf16>, vector<2x8x16xf32> -> vector<2x8x16xf32>
    "tpu.trace_stop"() : () -> ()
    %34 = vector.shape_cast %33 : vector<2x8x16xf32> to vector<16x16xf32>
    %cst_22 = arith.constant dense<0.000000e+00> : vector<16x2xf32>
    %35 = tpu.matmul %34, %8, %cst_22 {dimension_numbers = #tpu.dot_dimension_numbers<[1], [0], [0], [1], [0, 0, 1, 1], [], []>} : vector<16x16xf32>, vector<16x2xf32>, vector<16x2xf32> -> vector<16x2xf32>
    %cst_23 = arith.constant dense<0xFF800000> : vector<16xf32>
    %36 = vector.multi_reduction <maximumf>, %35, %cst_23 [1] : vector<16x2xf32> to vector<16xf32>
    %37 = vector.shape_cast %36 : vector<16xf32> to vector<16x1xf32>
    %38 = vector.broadcast %37 : vector<16x1xf32> to vector<16x2xf32>
    %39 = arith.subf %35, %38 : vector<16x2xf32>
    %40 = math.exp %39 : vector<16x2xf32>
    %cst_24 = arith.constant dense<0.000000e+00> : vector<16xf32>
    %41 = vector.multi_reduction <add>, %40, %cst_24 [1] : vector<16x2xf32> to vector<16xf32>
    %42 = vector.shape_cast %41 : vector<16xf32> to vector<16x1xf32>
    %43 = tpu.reciprocal %42 {approx = true} : vector<16x1xf32> -> vector<16x1xf32>
    %44 = vector.broadcast %43 : vector<16x1xf32> to vector<16x2xf32>
    %45 = arith.mulf %40, %44 : vector<16x2xf32>
    %cst_25 = arith.constant dense<0.000000e+00> : vector<16x16xf32>
    %46 = tpu.matmul %45, %9, %cst_25 {dimension_numbers = #tpu.dot_dimension_numbers<[1], [0], [0], [1], [0, 0, 1, 1], [], []>} : vector<16x2xf32>, vector<2x16xf32>, vector<16x16xf32> -> vector<16x16xf32>
    %47 = arith.mulf %46, %34 : vector<16x16xf32>
    %48 = arith.truncf %47 : vector<16x16xf32> to vector<16x16xbf16>
    %c0_26 = arith.constant 0 : index
    %c0_27 = arith.constant 0 : index
    %c0_28 = arith.constant 0 : index
    %49 = vector.load %arg8[%c0_26, %c0_27, %c0_28] : memref<4x16x128xbf16, #tpu.memory_space<vmem>>, vector<1x16x128xbf16>
    %50 = vector.shape_cast %49 : vector<1x16x128xbf16> to vector<16x128xbf16>
    %cst_29 = arith.constant dense<0.000000e+00> : vector<16x128xf32>
    %51 = tpu.matmul %48, %50, %cst_29 {dimension_numbers = #tpu.dot_dimension_numbers<[1], [0], [0], [1], [0, 0, 1, 1], [], []>} : vector<16x16xbf16>, vector<16x128xbf16>, vector<16x128xf32> -> vector<16x128xf32>
    %52 = arith.addf %10, %51 : vector<16x128xf32>
    %c1 = arith.constant 1 : index
    %c0_30 = arith.constant 0 : index
    %c0_31 = arith.constant 0 : index
    %53 = vector.load %arg3[%c1, %c0_30, %c0_31] : memref<4x32x8xbf16, #tpu.memory_space<vmem>>, vector<1x32x8xbf16>
    %54 = vector.shape_cast %53 : vector<1x32x8xbf16> to vector<32x8xbf16>
    %cst_32 = arith.constant dense<0.000000e+00> : vector<16x8xf32>
    %55 = tpu.matmul %1, %54, %cst_32 {dimension_numbers = #tpu.dot_dimension_numbers<[1], [0], [0], [1], [0, 0, 1, 1], [], []>} : vector<16x32xbf16>, vector<32x8xbf16>, vector<16x8xf32> -> vector<16x8xf32>
    %c1_33 = arith.constant 1 : index
    %c0_34 = arith.constant 0 : index
    %c0_35 = arith.constant 0 : index
    %56 = vector.load %arg4[%c1_33, %c0_34, %c0_35] : memref<4x32x8xbf16, #tpu.memory_space<vmem>>, vector<1x32x8xbf16>
    %57 = vector.shape_cast %56 : vector<1x32x8xbf16> to vector<32x8xbf16>
    %cst_36 = arith.constant dense<0.000000e+00> : vector<16x8xf32>
    %58 = tpu.matmul %3, %57, %cst_36 {dimension_numbers = #tpu.dot_dimension_numbers<[1], [0], [0], [1], [0, 0, 1, 1], [], []>} : vector<16x32xbf16>, vector<32x8xbf16>, vector<16x8xf32> -> vector<16x8xf32>
    %59 = vector.shape_cast %55 : vector<16x8xf32> to vector<2x8x8xf32>
    %60 = arith.truncf %59 : vector<2x8x8xf32> to vector<2x8x8xbf16>
    %61 = vector.shape_cast %58 : vector<16x8xf32> to vector<2x8x8xf32>
    %62 = arith.truncf %61 : vector<2x8x8xf32> to vector<2x8x8xbf16>
    "tpu.trace_start"() <{level = 10 : i32, message = "btp,bwp->btw"}> : () -> ()
    %cst_37 = arith.constant dense<0.000000e+00> : vector<2x8x8xf32>
    %63 = tpu.matmul %60, %62, %cst_37 {dimension_numbers = #tpu.dot_dimension_numbers<[2], [2], [1], [1], [0, 0, 0, 1, 1, 1], [0], [0]>} : vector<2x8x8xbf16>, vector<2x8x8xbf16>, vector<2x8x8xf32> -> vector<2x8x8xf32>
    "tpu.trace_stop"() : () -> ()
    %cst_38 = arith.constant dense<0xFF800000> : vector<2x8xf32>
    %64 = vector.multi_reduction <maximumf>, %63, %cst_38 [2] : vector<2x8x8xf32> to vector<2x8xf32>
    %65 = vector.shape_cast %64 : vector<2x8xf32> to vector<2x8x1xf32>
    %66 = vector.broadcast %65 : vector<2x8x1xf32> to vector<2x8x8xf32>
    %67 = arith.subf %63, %66 : vector<2x8x8xf32>
    %68 = math.exp %67 : vector<2x8x8xf32>
    %cst_39 = arith.constant dense<0.000000e+00> : vector<2x8xf32>
    %69 = vector.multi_reduction <add>, %68, %cst_39 [2] : vector<2x8x8xf32> to vector<2x8xf32>
    %70 = vector.shape_cast %69 : vector<2x8xf32> to vector<2x8x1xf32>
    %71 = tpu.reciprocal %70 {approx = true} : vector<2x8x1xf32> -> vector<2x8x1xf32>
    %72 = vector.broadcast %71 : vector<2x8x1xf32> to vector<2x8x8xf32>
    %73 = arith.mulf %68, %72 : vector<2x8x8xf32>
    %74 = arith.truncf %73 : vector<2x8x8xf32> to vector<2x8x8xbf16>
    "tpu.trace_start"() <{level = 10 : i32, message = "btw,bwn->btn"}> : () -> ()
    %cst_40 = arith.constant dense<0.000000e+00> : vector<2x8x16xf32>
    %75 = tpu.matmul %74, %7, %cst_40 {dimension_numbers = #tpu.dot_dimension_numbers<[2], [1], [1], [2], [0, 0, 0, 1, 1, 2], [0], [0]>} : vector<2x8x8xbf16>, vector<2x8x16xbf16>, vector<2x8x16xf32> -> vector<2x8x16xf32>
    "tpu.trace_stop"() : () -> ()
    %76 = vector.shape_cast %75 : vector<2x8x16xf32> to vector<16x16xf32>
    %cst_41 = arith.constant dense<0.000000e+00> : vector<16x2xf32>
    %77 = tpu.matmul %76, %8, %cst_41 {dimension_numbers = #tpu.dot_dimension_numbers<[1], [0], [0], [1], [0, 0, 1, 1], [], []>} : vector<16x16xf32>, vector<16x2xf32>, vector<16x2xf32> -> vector<16x2xf32>
    %cst_42 = arith.constant dense<0xFF800000> : vector<16xf32>
    %78 = vector.multi_reduction <maximumf>, %77, %cst_42 [1] : vector<16x2xf32> to vector<16xf32>
    %79 = vector.shape_cast %78 : vector<16xf32> to vector<16x1xf32>
    %80 = vector.broadcast %79 : vector<16x1xf32> to vector<16x2xf32>
    %81 = arith.subf %77, %80 : vector<16x2xf32>
    %82 = math.exp %81 : vector<16x2xf32>
    %cst_43 = arith.constant dense<0.000000e+00> : vector<16xf32>
    %83 = vector.multi_reduction <add>, %82, %cst_43 [1] : vector<16x2xf32> to vector<16xf32>
    %84 = vector.shape_cast %83 : vector<16xf32> to vector<16x1xf32>
    %85 = tpu.reciprocal %84 {approx = true} : vector<16x1xf32> -> vector<16x1xf32>
    %86 = vector.broadcast %85 : vector<16x1xf32> to vector<16x2xf32>
    %87 = arith.mulf %82, %86 : vector<16x2xf32>
    %cst_44 = arith.constant dense<0.000000e+00> : vector<16x16xf32>
    %88 = tpu.matmul %87, %9, %cst_44 {dimension_numbers = #tpu.dot_dimension_numbers<[1], [0], [0], [1], [0, 0, 1, 1], [], []>} : vector<16x2xf32>, vector<2x16xf32>, vector<16x16xf32> -> vector<16x16xf32>
    %89 = arith.mulf %88, %76 : vector<16x16xf32>
    %90 = arith.truncf %89 : vector<16x16xf32> to vector<16x16xbf16>
    %c1_45 = arith.constant 1 : index
    %c0_46 = arith.constant 0 : index
    %c0_47 = arith.constant 0 : index
    %91 = vector.load %arg8[%c1_45, %c0_46, %c0_47] : memref<4x16x128xbf16, #tpu.memory_space<vmem>>, vector<1x16x128xbf16>
    %92 = vector.shape_cast %91 : vector<1x16x128xbf16> to vector<16x128xbf16>
    %cst_48 = arith.constant dense<0.000000e+00> : vector<16x128xf32>
    %93 = tpu.matmul %90, %92, %cst_48 {dimension_numbers = #tpu.dot_dimension_numbers<[1], [0], [0], [1], [0, 0, 1, 1], [], []>} : vector<16x16xbf16>, vector<16x128xbf16>, vector<16x128xf32> -> vector<16x128xf32>
    %94 = arith.addf %52, %93 : vector<16x128xf32>
    %c2 = arith.constant 2 : index
    %c0_49 = arith.constant 0 : index
    %c0_50 = arith.constant 0 : index
    %95 = vector.load %arg3[%c2, %c0_49, %c0_50] : memref<4x32x8xbf16, #tpu.memory_space<vmem>>, vector<1x32x8xbf16>
    %96 = vector.shape_cast %95 : vector<1x32x8xbf16> to vector<32x8xbf16>
    %cst_51 = arith.constant dense<0.000000e+00> : vector<16x8xf32>
    %97 = tpu.matmul %1, %96, %cst_51 {dimension_numbers = #tpu.dot_dimension_numbers<[1], [0], [0], [1], [0, 0, 1, 1], [], []>} : vector<16x32xbf16>, vector<32x8xbf16>, vector<16x8xf32> -> vector<16x8xf32>
    %c2_52 = arith.constant 2 : index
    %c0_53 = arith.constant 0 : index
    %c0_54 = arith.constant 0 : index
    %98 = vector.load %arg4[%c2_52, %c0_53, %c0_54] : memref<4x32x8xbf16, #tpu.memory_space<vmem>>, vector<1x32x8xbf16>
    %99 = vector.shape_cast %98 : vector<1x32x8xbf16> to vector<32x8xbf16>
    %cst_55 = arith.constant dense<0.000000e+00> : vector<16x8xf32>
    %100 = tpu.matmul %3, %99, %cst_55 {dimension_numbers = #tpu.dot_dimension_numbers<[1], [0], [0], [1], [0, 0, 1, 1], [], []>} : vector<16x32xbf16>, vector<32x8xbf16>, vector<16x8xf32> -> vector<16x8xf32>
    %101 = vector.shape_cast %97 : vector<16x8xf32> to vector<2x8x8xf32>
    %102 = arith.truncf %101 : vector<2x8x8xf32> to vector<2x8x8xbf16>
    %103 = vector.shape_cast %100 : vector<16x8xf32> to vector<2x8x8xf32>
    %104 = arith.truncf %103 : vector<2x8x8xf32> to vector<2x8x8xbf16>
    "tpu.trace_start"() <{level = 10 : i32, message = "btp,bwp->btw"}> : () -> ()
    %cst_56 = arith.constant dense<0.000000e+00> : vector<2x8x8xf32>
    %105 = tpu.matmul %102, %104, %cst_56 {dimension_numbers = #tpu.dot_dimension_numbers<[2], [2], [1], [1], [0, 0, 0, 1, 1, 1], [0], [0]>} : vector<2x8x8xbf16>, vector<2x8x8xbf16>, vector<2x8x8xf32> -> vector<2x8x8xf32>
    "tpu.trace_stop"() : () -> ()
    %cst_57 = arith.constant dense<0xFF800000> : vector<2x8xf32>
    %106 = vector.multi_reduction <maximumf>, %105, %cst_57 [2] : vector<2x8x8xf32> to vector<2x8xf32>
    %107 = vector.shape_cast %106 : vector<2x8xf32> to vector<2x8x1xf32>
    %108 = vector.broadcast %107 : vector<2x8x1xf32> to vector<2x8x8xf32>
    %109 = arith.subf %105, %108 : vector<2x8x8xf32>
    %110 = math.exp %109 : vector<2x8x8xf32>
    %cst_58 = arith.constant dense<0.000000e+00> : vector<2x8xf32>
    %111 = vector.multi_reduction <add>, %110, %cst_58 [2] : vector<2x8x8xf32> to vector<2x8xf32>
    %112 = vector.shape_cast %111 : vector<2x8xf32> to vector<2x8x1xf32>
    %113 = tpu.reciprocal %112 {approx = true} : vector<2x8x1xf32> -> vector<2x8x1xf32>
    %114 = vector.broadcast %113 : vector<2x8x1xf32> to vector<2x8x8xf32>
    %115 = arith.mulf %110, %114 : vector<2x8x8xf32>
    %116 = arith.truncf %115 : vector<2x8x8xf32> to vector<2x8x8xbf16>
    "tpu.trace_start"() <{level = 10 : i32, message = "btw,bwn->btn"}> : () -> ()
    %cst_59 = arith.constant dense<0.000000e+00> : vector<2x8x16xf32>
    %117 = tpu.matmul %116, %7, %cst_59 {dimension_numbers = #tpu.dot_dimension_numbers<[2], [1], [1], [2], [0, 0, 0, 1, 1, 2], [0], [0]>} : vector<2x8x8xbf16>, vector<2x8x16xbf16>, vector<2x8x16xf32> -> vector<2x8x16xf32>
    "tpu.trace_stop"() : () -> ()
    %118 = vector.shape_cast %117 : vector<2x8x16xf32> to vector<16x16xf32>
    %cst_60 = arith.constant dense<0.000000e+00> : vector<16x2xf32>
    %119 = tpu.matmul %118, %8, %cst_60 {dimension_numbers = #tpu.dot_dimension_numbers<[1], [0], [0], [1], [0, 0, 1, 1], [], []>} : vector<16x16xf32>, vector<16x2xf32>, vector<16x2xf32> -> vector<16x2xf32>
    %cst_61 = arith.constant dense<0xFF800000> : vector<16xf32>
    %120 = vector.multi_reduction <maximumf>, %119, %cst_61 [1] : vector<16x2xf32> to vector<16xf32>
    %121 = vector.shape_cast %120 : vector<16xf32> to vector<16x1xf32>
    %122 = vector.broadcast %121 : vector<16x1xf32> to vector<16x2xf32>
    %123 = arith.subf %119, %122 : vector<16x2xf32>
    %124 = math.exp %123 : vector<16x2xf32>
    %cst_62 = arith.constant dense<0.000000e+00> : vector<16xf32>
    %125 = vector.multi_reduction <add>, %124, %cst_62 [1] : vector<16x2xf32> to vector<16xf32>
    %126 = vector.shape_cast %125 : vector<16xf32> to vector<16x1xf32>
    %127 = tpu.reciprocal %126 {approx = true} : vector<16x1xf32> -> vector<16x1xf32>
    %128 = vector.broadcast %127 : vector<16x1xf32> to vector<16x2xf32>
    %129 = arith.mulf %124, %128 : vector<16x2xf32>
    %cst_63 = arith.constant dense<0.000000e+00> : vector<16x16xf32>
    %130 = tpu.matmul %129, %9, %cst_63 {dimension_numbers = #tpu.dot_dimension_numbers<[1], [0], [0], [1], [0, 0, 1, 1], [], []>} : vector<16x2xf32>, vector<2x16xf32>, vector<16x16xf32> -> vector<16x16xf32>
    %131 = arith.mulf %130, %118 : vector<16x16xf32>
    %132 = arith.truncf %131 : vector<16x16xf32> to vector<16x16xbf16>
    %c2_64 = arith.constant 2 : index
    %c0_65 = arith.constant 0 : index
    %c0_66 = arith.constant 0 : index
    %133 = vector.load %arg8[%c2_64, %c0_65, %c0_66] : memref<4x16x128xbf16, #tpu.memory_space<vmem>>, vector<1x16x128xbf16>
    %134 = vector.shape_cast %133 : vector<1x16x128xbf16> to vector<16x128xbf16>
    %cst_67 = arith.constant dense<0.000000e+00> : vector<16x128xf32>
    %135 = tpu.matmul %132, %134, %cst_67 {dimension_numbers = #tpu.dot_dimension_numbers<[1], [0], [0], [1], [0, 0, 1, 1], [], []>} : vector<16x16xbf16>, vector<16x128xbf16>, vector<16x128xf32> -> vector<16x128xf32>
    %136 = arith.addf %94, %135 : vector<16x128xf32>
    %c3 = arith.constant 3 : index
    %c0_68 = arith.constant 0 : index
    %c0_69 = arith.constant 0 : index
    %137 = vector.load %arg3[%c3, %c0_68, %c0_69] : memref<4x32x8xbf16, #tpu.memory_space<vmem>>, vector<1x32x8xbf16>
    %138 = vector.shape_cast %137 : vector<1x32x8xbf16> to vector<32x8xbf16>
    %cst_70 = arith.constant dense<0.000000e+00> : vector<16x8xf32>
    %139 = tpu.matmul %1, %138, %cst_70 {dimension_numbers = #tpu.dot_dimension_numbers<[1], [0], [0], [1], [0, 0, 1, 1], [], []>} : vector<16x32xbf16>, vector<32x8xbf16>, vector<16x8xf32> -> vector<16x8xf32>
    %c3_71 = arith.constant 3 : index
    %c0_72 = arith.constant 0 : index
    %c0_73 = arith.constant 0 : index
    %140 = vector.load %arg4[%c3_71, %c0_72, %c0_73] : memref<4x32x8xbf16, #tpu.memory_space<vmem>>, vector<1x32x8xbf16>
    %141 = vector.shape_cast %140 : vector<1x32x8xbf16> to vector<32x8xbf16>
    %cst_74 = arith.constant dense<0.000000e+00> : vector<16x8xf32>
    %142 = tpu.matmul %3, %141, %cst_74 {dimension_numbers = #tpu.dot_dimension_numbers<[1], [0], [0], [1], [0, 0, 1, 1], [], []>} : vector<16x32xbf16>, vector<32x8xbf16>, vector<16x8xf32> -> vector<16x8xf32>
    %143 = vector.shape_cast %139 : vector<16x8xf32> to vector<2x8x8xf32>
    %144 = arith.truncf %143 : vector<2x8x8xf32> to vector<2x8x8xbf16>
    %145 = vector.shape_cast %142 : vector<16x8xf32> to vector<2x8x8xf32>
    %146 = arith.truncf %145 : vector<2x8x8xf32> to vector<2x8x8xbf16>
    "tpu.trace_start"() <{level = 10 : i32, message = "btp,bwp->btw"}> : () -> ()
    %cst_75 = arith.constant dense<0.000000e+00> : vector<2x8x8xf32>
    %147 = tpu.matmul %144, %146, %cst_75 {dimension_numbers = #tpu.dot_dimension_numbers<[2], [2], [1], [1], [0, 0, 0, 1, 1, 1], [0], [0]>} : vector<2x8x8xbf16>, vector<2x8x8xbf16>, vector<2x8x8xf32> -> vector<2x8x8xf32>
    "tpu.trace_stop"() : () -> ()
    %cst_76 = arith.constant dense<0xFF800000> : vector<2x8xf32>
    %148 = vector.multi_reduction <maximumf>, %147, %cst_76 [2] : vector<2x8x8xf32> to vector<2x8xf32>
    %149 = vector.shape_cast %148 : vector<2x8xf32> to vector<2x8x1xf32>
    %150 = vector.broadcast %149 : vector<2x8x1xf32> to vector<2x8x8xf32>
    %151 = arith.subf %147, %150 : vector<2x8x8xf32>
    %152 = math.exp %151 : vector<2x8x8xf32>
    %cst_77 = arith.constant dense<0.000000e+00> : vector<2x8xf32>
    %153 = vector.multi_reduction <add>, %152, %cst_77 [2] : vector<2x8x8xf32> to vector<2x8xf32>
    %154 = vector.shape_cast %153 : vector<2x8xf32> to vector<2x8x1xf32>
    %155 = tpu.reciprocal %154 {approx = true} : vector<2x8x1xf32> -> vector<2x8x1xf32>
    %156 = vector.broadcast %155 : vector<2x8x1xf32> to vector<2x8x8xf32>
    %157 = arith.mulf %152, %156 : vector<2x8x8xf32>
    %158 = arith.truncf %157 : vector<2x8x8xf32> to vector<2x8x8xbf16>
    "tpu.trace_start"() <{level = 10 : i32, message = "btw,bwn->btn"}> : () -> ()
    %cst_78 = arith.constant dense<0.000000e+00> : vector<2x8x16xf32>
    %159 = tpu.matmul %158, %7, %cst_78 {dimension_numbers = #tpu.dot_dimension_numbers<[2], [1], [1], [2], [0, 0, 0, 1, 1, 2], [0], [0]>} : vector<2x8x8xbf16>, vector<2x8x16xbf16>, vector<2x8x16xf32> -> vector<2x8x16xf32>
    "tpu.trace_stop"() : () -> ()
    %160 = vector.shape_cast %159 : vector<2x8x16xf32> to vector<16x16xf32>
    %cst_79 = arith.constant dense<0.000000e+00> : vector<16x2xf32>
    %161 = tpu.matmul %160, %8, %cst_79 {dimension_numbers = #tpu.dot_dimension_numbers<[1], [0], [0], [1], [0, 0, 1, 1], [], []>} : vector<16x16xf32>, vector<16x2xf32>, vector<16x2xf32> -> vector<16x2xf32>
    %cst_80 = arith.constant dense<0xFF800000> : vector<16xf32>
    %162 = vector.multi_reduction <maximumf>, %161, %cst_80 [1] : vector<16x2xf32> to vector<16xf32>
    %163 = vector.shape_cast %162 : vector<16xf32> to vector<16x1xf32>
    %164 = vector.broadcast %163 : vector<16x1xf32> to vector<16x2xf32>
    %165 = arith.subf %161, %164 : vector<16x2xf32>
    %166 = math.exp %165 : vector<16x2xf32>
    %cst_81 = arith.constant dense<0.000000e+00> : vector<16xf32>
    %167 = vector.multi_reduction <add>, %166, %cst_81 [1] : vector<16x2xf32> to vector<16xf32>
    %168 = vector.shape_cast %167 : vector<16xf32> to vector<16x1xf32>
    %169 = tpu.reciprocal %168 {approx = true} : vector<16x1xf32> -> vector<16x1xf32>
    %170 = vector.broadcast %169 : vector<16x1xf32> to vector<16x2xf32>
    %171 = arith.mulf %166, %170 : vector<16x2xf32>
    %cst_82 = arith.constant dense<0.000000e+00> : vector<16x16xf32>
    %172 = tpu.matmul %171, %9, %cst_82 {dimension_numbers = #tpu.dot_dimension_numbers<[1], [0], [0], [1], [0, 0, 1, 1], [], []>} : vector<16x2xf32>, vector<2x16xf32>, vector<16x16xf32> -> vector<16x16xf32>
    %173 = arith.mulf %172, %160 : vector<16x16xf32>
    %174 = arith.truncf %173 : vector<16x16xf32> to vector<16x16xbf16>
    %c3_83 = arith.constant 3 : index
    %c0_84 = arith.constant 0 : index
    %c0_85 = arith.constant 0 : index
    %175 = vector.load %arg8[%c3_83, %c0_84, %c0_85] : memref<4x16x128xbf16, #tpu.memory_space<vmem>>, vector<1x16x128xbf16>
    %176 = vector.shape_cast %175 : vector<1x16x128xbf16> to vector<16x128xbf16>
    %cst_86 = arith.constant dense<0.000000e+00> : vector<16x128xf32>
    %177 = tpu.matmul %174, %176, %cst_86 {dimension_numbers = #tpu.dot_dimension_numbers<[1], [0], [0], [1], [0, 0, 1, 1], [], []>} : vector<16x16xbf16>, vector<16x128xbf16>, vector<16x128xf32> -> vector<16x128xf32>
    %178 = arith.addf %136, %177 : vector<16x128xf32>
    %c0_87 = arith.constant 0 : index
    %c0_88 = arith.constant 0 : index
    %179 = vector.load %arg9[%c0_87, %c0_88] : memref<16x128xf32, #tpu.memory_space<vmem>>, vector<16x128xf32>
    tpu.vector_store %arg9[%c0_87, %c0_88], %178 {strides = array<i32>} : memref<16x128xf32, #tpu.memory_space<vmem>>, vector<16x128xf32>,
    return
  }
  func.func @transform_0(%arg0: i32) -> (i32, i32) {
    %c0_i32 = arith.constant 0 : i32
    %c0_i32_0 = arith.constant 0 : i32
    return %arg0, %c0_i32 : i32, i32
  }
  func.func @transform_1(%arg0: i32) -> (i32, i32) {
    %c0_i32 = arith.constant 0 : i32
    %c0_i32_0 = arith.constant 0 : i32
    return %arg0, %c0_i32 : i32, i32
  }
  func.func @transform_2(%arg0: i32) -> (i32, i32, i32) {
    %c0_i32 = arith.constant 0 : i32
    %c0_i32_0 = arith.constant 0 : i32
    %c0_i32_1 = arith.constant 0 : i32
    %c0_i32_2 = arith.constant 0 : i32
    return %c0_i32, %c0_i32_0, %c0_i32_1 : i32, i32, i32
  }
  func.func @transform_3(%arg0: i32) -> (i32, i32, i32) {
    %c0_i32 = arith.constant 0 : i32
    %c0_i32_0 = arith.constant 0 : i32
    %c0_i32_1 = arith.constant 0 : i32
    %c0_i32_2 = arith.constant 0 : i32
    return %c0_i32, %c0_i32_0, %c0_i32_1 : i32, i32, i32
  }
  func.func @transform_4(%arg0: i32) -> (i32, i32) {
    %c0_i32 = arith.constant 0 : i32
    %c0_i32_0 = arith.constant 0 : i32
    %c0_i32_1 = arith.constant 0 : i32
    return %c0_i32, %c0_i32_0 : i32, i32
  }
  func.func @transform_5(%arg0: i32) -> (i32, i32) {
    %c0_i32 = arith.constant 0 : i32
    %c0_i32_0 = arith.constant 0 : i32
    %c0_i32_1 = arith.constant 0 : i32
    return %c0_i32, %c0_i32_0 : i32, i32
  }
  func.func @transform_6(%arg0: i32) -> (i32, i32) {
    %c0_i32 = arith.constant 0 : i32
    %c0_i32_0 = arith.constant 0 : i32
    %c0_i32_1 = arith.constant 0 : i32
    return %c0_i32, %c0_i32_0 : i32, i32
  }
  func.func @transform_7(%arg0: i32) -> (i32, i32, i32) {
    %c0_i32 = arith.constant 0 : i32
    %c0_i32_0 = arith.constant 0 : i32
    %c0_i32_1 = arith.constant 0 : i32
    %c0_i32_2 = arith.constant 0 : i32
    return %c0_i32, %c0_i32_0, %c0_i32_1 : i32, i32, i32
  }
  func.func @transform_8(%arg0: i32) -> (i32, i32) {
    %c0_i32 = arith.constant 0 : i32
    %c0_i32_0 = arith.constant 0 : i32
    return %arg0, %c0_i32 : i32, i32
  }
}

</mosaic_0001>

<bundles_post_ra>
// kernel: tpu_custom_call.1
= control target key start
LH: loop header
LB: loop body
LE: loop exit
PB: predicated region body
PF: predicated region fallthrough
CT: control target
= control target key end

     0   :  { %v2936_v1 = vmov 0.0   ;;  %vm2937_vm0 = vmmov 0   ;;  %vm53_vm1 = vcmask 261120   ;;  %s3355_s0 = inlined_call_operand.vmem [shape: f32[16,32], index: 0, kind: input, shape index: {}]   ;;  %s3356_s1 = inlined_call_operand.vmem [shape: f32[16,32], index: 1, kind: input, shape index: {}]   ;;  %s3357_s2 = inlined_call_operand.vmem [shape: bf16[4,32,8], index: 2, kind: input, shape index: {}]   ;;  %s3358_s3 = inlined_call_operand.vmem [shape: bf16[4,32,8], index: 3, kind: input, shape index: {}]   ;;  %s3359_s4 = inlined_call_operand.vmem [shape: bf16[32,16], index: 4, kind: input, shape index: {}]   ;;  %s3360_s5 = inlined_call_operand.vmem [shape: f32[16,2], index: 5, kind: input, shape index: {}]   ;;  %s3361_s6 = inlined_call_operand.vmem [shape: f32[2,16], index: 6, kind: input, shape index: {}]   ;;  %s3362_s7 = inlined_call_operand.vmem [shape: bf16[4,16,128], index: 7, kind: input, shape index: {}]   ;;  %s3363_s8 = inlined_call_operand.hbm [shape: f32[16,128], index: 8, kind: output, shape index: {}]  }
   0x1   :  { %v2828_v0 = vld [vmem:[%s3359_s4 + $0x8] sm:$0xff]   ;;  %2583 = vmatprep.subr.bf16.mxu0 %v2936_v1  ;;  %v2829_v2 = vld [vmem:[%s3359_s4] sm:$0xff]   ;;  %2591 = vmatprep.subr.bf16.mxu1 %v2936_v1 }
   0x2   :  { %2584 = vmatpush3.bf16.msra.mxu0 %v2828_v0  ;;  %2587 = vmatprep.mubr.msk.bf16.mxu0 %vm2937_vm0, %v2936_v1  ;;  %v34_v3 = vld [vmem:[%s3356_s1] sm:$0xff]  ;;  %v35_v4 = vld [vmem:[%s3356_s1 + $0x8] sm:$0xff] }
   0x3   :  { %2585 = vmatprep.subr.bf16.mxu0 %v2936_v1  ;;  %2595 = vmatprep.mubr.msk.bf16.mxu1 %vm2937_vm0, %v2936_v1  ;;  %v2831_v5 = vld [vmem:[%s3357_s2 + $0x8] sm:$0xff]   ;;  %v3008_v6 = vpack.c.bf16 %v35_v4, %v34_v3  ;;  %v2833_v8 = vld [vmem:[%s3357_s2] sm:$0xff]  }
   0x4   :  { %v2830_v7 = vld [vmem:[%s3358_s3 + $0x8] sm:$0xff]   ;;  %2592 = vmatpush3.bf16.msra.mxu1 %v2831_v5  ;;  %v31_v9 = vld [vmem:[%s3355_s0] sm:$0xff] }
   0x5   :  { %2593 = vmatprep.subr.bf16.mxu1 %v2936_v1  ;;  %v32_v10 = vld [vmem:[%s3355_s0 + $0x8] sm:$0xff]  ;;  %v2832_v11 = vld [vmem:[%s3358_s3] sm:$0xff]  }
   0x6   :  { %2586 = vmatpush3.bf16.msra.mxu0 %v2829_v2  ;;  %v3029_v12 = vpack.c.bf16 %v32_v10, %v31_v9 }
   0x7   :  { %2599 = vmatprep.subr.bf16.mxu0 %v2936_v1 }
   0x8   :  { %2594 = vmatpush3.bf16.msra.mxu1 %v2833_v8 }
   0x9   :  { %2588 = vmatmul.mubr.msk.bf16.vlgmr.msra.gmra.mxu0 %vm53_vm1, %v3008_v6  ;;  %2607 = vmatprep.subr.bf16.mxu1 %v2936_v1 }
   0xa   :  { %2600 = vmatpush3.bf16.msra.mxu0 %v2830_v7  ;;  %2603 = vmatprep.mubr.msk.bf16.mxu0 %vm2937_vm0, %v2936_v1 }
   0xb   :  { %2601 = vmatprep.subr.bf16.mxu0 %v2936_v1  ;;  %2596 = vmatmul.mubr.msk.bf16.vlgmr.msra.gmra.mxu1 %vm53_vm1, %v3029_v12 }
   0xc   :  { %2609 = vmatprep.mubr.msk.bf16.mxu1 %vm2937_vm0, %v2936_v1 }
   0xe   :  { %2602 = vmatpush3.bf16.msra.mxu0 %v2832_v11 }
   0xf   :  { %2613 = vmatprep.subr.bf16.mxu0 %v2936_v1 }
  0x11   :  { %2604 = vmatmul.mubr.msk.bf16.vlgmr.msra.gmra.mxu0 %vm53_vm1, %v3008_v6 }
  0x12   :  { %2615 = vmatprep.mubr.msk.bf16.mxu0 %vm2937_vm0, %v2936_v1 }
  0x13   :  { %13 = vsyncpa [#allocation3], 0  ;;  %vm224_vm2 = vcmask 64512   ;;  %vm344_vm3 = vcmask 1043456   ;;  %v3068_v55 = vld [vmem:[%s3360_s5 + $0x8] sm:$0xff]  ;;  %v3079_v0 = vld [vmem:[%s3360_s5] sm:$0xff] }
  0x14   :  { %vm434_vm4 = vcmask 130048   ;;  %vm516_vm5 = vcmask 15360   ;;  %vm545_vm6 = vcmask 1041408   ;;  %s2938_s30 = smov [#allocation2]  }
  0xc9   :  { %v91_v13 = vpop.f32.mrf.mxu0 }
  0xca   :  { %v98_v28 = vpack.c.bf16 %v91_v13, %v91_v13 }
  0xcb   :  { %v2589_v14 = vpop.f32.mrf.mxu0  ;;  %v156_v16 = vpop.f32.mrf.mxu1 }
  0xcc   :  { %v220_v29 = vpack.c.bf16 %v156_v16, %v156_v16  ;;  %v3048_v31 = vsel %vm344_vm3, %v98_v28, 0  ;;  %v2837_v28 = vld [vmem:[%s3357_s2 + $0x10] sm:$0xff]  }
  0xcd   :  { %v94_v15 = vpop.f32.mrf.mxu0  ;;  %v2597_v18 = vpop.f32.mrf.mxu1 }
  0xce   :  { %v99_v32 = vpack.c.bf16 %v94_v15, %v94_v15 }
  0xcf   :  { %v2590_v17 = vpop.f32.mrf.mxu0  ;;  %v159_v20 = vpop.f32.mrf.mxu1 }
  0xd0   :  { %v221_v33 = vpack.c.bf16 %v159_v20, %v159_v20  ;;  %v3054_v34 = vsel %vm344_vm3, %v99_v32, 0 }
  0xd1   :  { %v213_v19 = vpop.f32.mrf.mxu0  ;;  %v2598_v23 = vpop.f32.mrf.mxu1 }
  0xd2   :  { %v222_v21 = vpack.c.bf16 %v213_v19, %v213_v19 }
  0xd3   :  { %v2605_v22 = vpop.f32.mrf.mxu0 }
  0xd4   :  { %v229_v24 = vsel %vm224_vm2, %v222_v21, 0 }
  0xd5   :  { %v216_v25 = vpop.f32.mrf.mxu0  ;;  %2608 = vmatpush3.bf16.xpose.msra.mxu1 %v229_v24 }
  0xd6   :  { %v223_v26 = vpack.c.bf16 %v216_v25, %v216_v25  ;;  %2619 = vmatprep.subr.bf16.mxu1 %v2936_v1 }
  0xd7   :  { %v2606_v27 = vpop.f32.mrf.mxu0 }
  0xd8   :  { %v275_v30 = vsel %vm224_vm2, %v223_v26, 0  ;;  %v3098_v26 = vld [vmem:[%s3361_s6] sm:$0x3]  ;;  %v2835_v27 = vld [vmem:[%s3357_s2 + $0x18] sm:$0xff]   ;;  %s2376_s6 = sshll.u32 %s2938_s30, 4  ;;  %s2377_s6 = int_to_ptr.vmem [resolvable:$true] %s2376_s6 }
  0xd9   :  { %2614 = vmatpush3.bf16.xpose.msra.mxu0 %v275_v30  ;;  %p2919_p1 = scmp.lt.s32.totalorder %s2377_s6, %s2377_s6 }
  0xda   :  { %2625 = vmatprep.subr.bf16.mxu0 %v2936_v1 }
  0xdc   :  { %2610 = vmatmul.mubr.msk.bf16.vlgmr.msra.gmra.mxu1 %vm224_vm2, %v220_v29 }
  0xdd   :  { %2620 = vmatpush3.bf16.msra.mxu1 %v3048_v31  ;;  %2621 = vmatprep.mubr.msk.bf16.mxu1 %vm2937_vm0, %v2936_v1 }
  0xde   :  { %2631 = vmatprep.subr.mxu1 %v3068_v55 }
  0xe0   :  { %2616 = vmatmul.mubr.msk.bf16.vlgmr.msra.gmra.mxu0 %vm224_vm2, %v221_v33 }
  0xe1   :  { %2626 = vmatpush3.bf16.msra.mxu0 %v3054_v34  ;;  %2627 = vmatprep.mubr.msk.bf16.mxu0 %vm2937_vm0, %v2936_v1 }
  0xe2   :  { %2643 = vmatprep.subr.bf16.mxu0 %v2936_v1 }
 0x19c   :  { %v265_v35 = vpop.f32.mrf.mxu1 }
 0x19d   :  { %v317_v36 = vsel %vm224_vm2, %v265_v35, -inf }
 0x19e   :  { %318 = vmax.xlane.f32.xlu0 %v317_v36  ;;  %v2611_v37 = vpop.f32.mrf.mxu1  ;;  %v2834_v36 = vld [vmem:[%s3358_s3 + $0x18] sm:$0xff]  }
 0x1a0   :  { %v268_v38 = vpop.f32.mrf.mxu1  ;;  %v311_v39 = vpop.f32.mrf.mxu0 }
 0x1a1   :  { %v320_v40 = vsel %vm224_vm2, %v311_v39, -inf  ;;  %v2836_v38 = vld [vmem:[%s3358_s3 + $0x10] sm:$0xff]  }
 0x1a2   :  { %v2617_v41 = vpop.f32.mrf.mxu0  ;;  %321 = vmax.xlane.f32.xlu0 %v320_v40  ;;  %v2612_v42 = vpop.f32.mrf.mxu1 }
 0x1a4   :  { %v314_v43 = vpop.f32.mrf.mxu0 }
 0x1a6   :  { %v2618_v44 = vpop.f32.mrf.mxu0 }
 0x227   :  { %v319_v45 = vpop.xlane.xlu0 %318 }
 0x228   :  { %v323_v46 = vsub.f32 %v265_v35, %v319_v45 }
 0x22a   :  { %v325_v47 = vmul.f32 1.442695, %v323_v46 }
 0x22b   :  { %v322_v48 = vpop.xlane.xlu0 %321 }
 0x22c   :  { %2850 = vpow2.f32 %v325_v47  ;;  %v324_v49 = vsub.f32 %v311_v39, %v322_v48 }
 0x22e   :  { %v327_v50 = vmul.f32 1.442695, %v324_v49 }
 0x230   :  { %2852 = vpow2.f32 %v327_v50 }
 0x239   :  { %v2851_v51 = vpop.eup %2850 }
 0x23a   :  { %v329_v52 = vsel %vm224_vm2, %v2851_v51, 0.0 }
 0x23b   :  { %330 = vadd.xlane.f32.xlu1 %v329_v52 }
 0x23d   :  { %v2853_v53 = vpop.eup %2852 }
 0x23e   :  { %v332_v54 = vsel %vm224_vm2, %v2853_v53, 0.0 }
 0x23f   :  { %333 = vadd.xlane.f32.xlu1 %v332_v54 }
 0x2c4   :  { %v331_v56 = vpop.xlane.xlu1 %330 }
 0x2c5   :  { %2854 = vrcp.f32 %v331_v56 }
 0x2c8   :  { %v334_v57 = vpop.xlane.xlu1 %333 }
 0x2c9   :  { %2856 = vrcp.f32 %v334_v57 }
 0x2d2   :  { %v2855_v58 = vpop.eup %2854 }
 0x2d3   :  { %v337_v59 = vmul.f32 %v2855_v58, %v2851_v51 }
 0x2d5   :  { %v339_v60 = vpack.c.bf16 %v337_v59, %v337_v59 }
 0x2d6   :  { %v2857_v61 = vpop.eup %2856 }
 0x2d7   :  { %2622 = vmatmul.mubr.msk.bf16.vlgmr.msra.gmra.mxu1 %vm224_vm2, %v339_v60  ;;  %v338_v62 = vmul.f32 %v2857_v61, %v2853_v53 }
 0x2d8   :  { %2632 = vmatpush3.msra.mxu1 %v3068_v55 }
 0x2d9   :  { %v340_v63 = vpack.c.bf16 %v338_v62, %v338_v62  ;;  %2633 = vmatprep.subr.mxu1 %v3079_v0 }
 0x2da   :  { %2634 = vmatpush3.msra.mxu1 %v3079_v0 }
 0x2db   :  { %2628 = vmatmul.mubr.msk.bf16.vlgmr.msra.gmra.mxu0 %vm224_vm2, %v340_v63  ;;  %2638 = vmatprep.subr.msk.mxu1 %vm545_vm6, %v3098_v26 }
 0x2dc   :  { %2647 = vmatprep.mubr.msk.bf16.mxu0 %vm2937_vm0, %v2936_v1  ;;  %2644 = vmatpush3.bf16.msra.mxu0 %v2835_v27 }
 0x2dd   :  { %2645 = vmatprep.subr.bf16.mxu0 %v2936_v1 }
 0x2e0   :  { %2646 = vmatpush3.bf16.msra.mxu0 %v2837_v28 }
 0x2e1   :  { %2659 = vmatprep.subr.bf16.mxu0 %v2936_v1 }
 0x2e3   :  { %2648 = vmatmul.mubr.msk.bf16.vlgmr.msra.gmra.mxu0 %vm53_vm1, %v3029_v12 }
 0x2e4   :  { %2661 = vmatprep.mubr.msk.bf16.mxu0 %vm2937_vm0, %v2936_v1 }
 0x397   :  { %v3083_v2 = vpop.f32.mrf.mxu1 }
 0x398   :  { %2635 = vmatprep.mubr.msk.f32.mxu1 %vm434_vm4, %v3083_v2 }
 0x399   :  { %v2623_v3 = vpop.f32.mrf.mxu1 }
 0x39b   :  { %v385_v4 = vpop.f32.mrf.mxu1  ;;  %v3087_v5 = vpop.f32.mrf.mxu0 }
 0x39c   :  { %2636 = vmatmul.mubr.msk.f32.vlgmr.msra.gmra.mxu1 %vm434_vm4, %v3087_v5 }
 0x39d   :  { %v2624_v7 = vpop.f32.mrf.mxu1  ;;  %v2629_v8 = vpop.f32.mrf.mxu0  ;;  %2639 = vmatpush3.msk.msra.mxu1 %vm545_vm6, %v3098_v26 }
 0x39e   :  { %2651 = vmatprep.subr.bf16.mxu1 %v2936_v1 }
 0x39f   :  { %v431_v9 = vpop.f32.mrf.mxu0 }
 0x3a1   :  { %v2630_v10 = vpop.f32.mrf.mxu0 }
 0x3a3   :  { %v680_v39 = vpop.f32.mrf.mxu0 }
 0x3a4   :  { %v745_v56 = vpack.c.bf16 %v680_v39, %v680_v39 }
 0x3a5   :  { %v2649_v40 = vpop.f32.mrf.mxu0 }
 0x3a7   :  { %v683_v41 = vpop.f32.mrf.mxu0 }
 0x3a8   :  { %v746_v58 = vpack.c.bf16 %v683_v41, %v683_v41 }
 0x3a9   :  { %v2650_v42 = vpop.f32.mrf.mxu0 }
 0x45c   :  { %v2637_v11 = vpop.f32.mrf.mxu1 }
 0x45d   :  { %v520_v13 = vsel %vm516_vm5, %v2637_v11, -inf }
 0x45e   :  { %521 = vmax.xlane.f32.xlu1 %v520_v13  ;;  %v507_v14 = vpop.f32.mrf.mxu1 }
 0x45f   :  { %v517_v15 = vsel %vm516_vm5, %v507_v14, -inf }
 0x460   :  { %518 = vmax.xlane.f32.xlu0 %v517_v15 }
 0x4e7   :  { %v522_v16 = vpop.xlane.xlu1 %521 }
 0x4e8   :  { %v524_v17 = vsub.f32 %v2637_v11, %v522_v16 }
 0x4e9   :  { %v519_v18 = vpop.xlane.xlu0 %518 }
 0x4ea   :  { %v527_v19 = vmul.f32 1.442695, %v524_v17  ;;  %v523_v20 = vsub.f32 %v507_v14, %v519_v18 }
 0x4ec   :  { %2858 = vpow2.f32 %v527_v19  ;;  %v525_v21 = vmul.f32 1.442695, %v523_v20 }
 0x4ee   :  { %2860 = vpow2.f32 %v525_v21 }
 0x4f9   :  { %v2859_v22 = vpop.eup %2858 }
 0x4fa   :  { %v532_v23 = vsel %vm516_vm5, %v2859_v22, 0.0 }
 0x4fb   :  { %v2861_v24 = vpop.eup %2860  ;;  %533 = vadd.xlane.f32.xlu1 %v532_v23 }
 0x4fc   :  { %v529_v25 = vsel %vm516_vm5, %v2861_v24, 0.0 }
 0x4fd   :  { %530 = vadd.xlane.f32.xlu0 %v529_v25 }
 0x584   :  { %v534_v29 = vpop.xlane.xlu1 %533 }
 0x585   :  { %2862 = vrcp.f32 %v534_v29 }
 0x586   :  { %v531_v30 = vpop.xlane.xlu0 %530 }
 0x587   :  { %2864 = vrcp.f32 %v531_v30 }
 0x592   :  { %v2863_v32 = vpop.eup %2862 }
 0x593   :  { %v538_v37 = vmul.f32 %v2863_v32, %v2859_v22 }
 0x594   :  { %v2865_v33 = vpop.eup %2864 }
 0x595   :  { %v537_v35 = vmul.f32 %v2865_v33, %v2861_v24 }
 0x597   :  { %2640 = vmatprep.mubr.msk.f32.mxu1 %vm516_vm5, %v537_v35 }
 0x598   :  { %2641 = vmatmul.mubr.msk.f32.vlgmr.msra.gmra.mxu1 %vm516_vm5, %v538_v37 }
 0x599   :  { %2652 = vmatpush3.bf16.msra.mxu1 %v2834_v36  ;;  %2655 = vmatprep.mubr.msk.bf16.mxu1 %vm2937_vm0, %v2936_v1 }
 0x59a   :  { %2653 = vmatprep.subr.bf16.mxu1 %v2936_v1 }
 0x59d   :  { %2654 = vmatpush3.bf16.msra.mxu1 %v2836_v38 }
 0x59e   :  { %2665 = vmatprep.subr.bf16.mxu1 %v2936_v1 }
 0x5a0   :  { %2656 = vmatmul.mubr.msk.bf16.vlgmr.msra.gmra.mxu1 %vm53_vm1, %v3008_v6 }
 0x5a1   :  { %2667 = vmatprep.mubr.msk.bf16.mxu1 %vm2937_vm0, %v2936_v1 }
 0x658   :  { %v2642_v43 = vpop.f32.mrf.mxu1 }
 0x659   :  { %v3134_v45 = vmul.f32 %v2642_v43, %v3087_v5 }
 0x65a   :  { %v615_v44 = vpop.f32.mrf.mxu1 }
 0x65b   :  { %v3137_v46 = vmul.f32 %v615_v44, %v3083_v2 }
 0x65d   :  { %v626_v47 = vpack.c.bf16 %v3134_v45, %v3137_v46  ;;  %v2841_v45 = vld [vmem:[%s3362_s7 + $0x8] sm:$0xff]  }
 0x660   :  { %v738_v48 = vpop.f32.mrf.mxu1 }
 0x661   :  { %v747_v49 = vpack.c.bf16 %v738_v48, %v738_v48 }
 0x662   :  { %v2657_v50 = vpop.f32.mrf.mxu1 }
 0x663   :  { %v753_v51 = vsel %vm224_vm2, %v747_v49, 0 }
 0x664   :  { %v741_v52 = vpop.f32.mrf.mxu1  ;;  %2660 = vmatpush3.bf16.xpose.msra.mxu0 %v753_v51 }
 0x665   :  { %v748_v53 = vpack.c.bf16 %v741_v52, %v741_v52  ;;  %2671 = vmatprep.subr.bf16.mxu0 %v2936_v1 }
 0x666   :  { %v2658_v54 = vpop.f32.mrf.mxu1 }
 0x667   :  { %v799_v57 = vsel %vm224_vm2, %v748_v53, 0 }
 0x668   :  { %2666 = vmatpush3.bf16.xpose.msra.mxu1 %v799_v57 }
 0x669   :  { %2677 = vmatprep.subr.bf16.mxu1 %v2936_v1 }
 0x66b   :  { %2662 = vmatmul.mubr.msk.bf16.vlgmr.msra.gmra.mxu0 %vm224_vm2, %v745_v56 }
 0x66c   :  { %2672 = vmatpush3.bf16.msra.mxu0 %v3048_v31  ;;  %2673 = vmatprep.mubr.msk.bf16.mxu0 %vm2937_vm0, %v2936_v1 }
 0x66d   :  { %2690 = vmatprep.subr.msk.mxu0 %vm545_vm6, %v3098_v26 }
 0x66f   :  { %2668 = vmatmul.mubr.msk.bf16.vlgmr.msra.gmra.mxu1 %vm224_vm2, %v746_v58 }
 0x670   :  { %2678 = vmatpush3.bf16.msra.mxu1 %v3054_v34  ;;  %2679 = vmatprep.mubr.msk.bf16.mxu1 %vm2937_vm0, %v2936_v1 }
 0x671   :  { %2683 = vmatprep.subr.mxu1 %v3068_v55 }
 0x72b   :  { %v789_v59 = vpop.f32.mrf.mxu0 }
 0x72c   :  { %v841_v60 = vsel %vm224_vm2, %v789_v59, -inf }
 0x72d   :  { %842 = vmax.xlane.f32.xlu0 %v841_v60  ;;  %v2663_v61 = vpop.f32.mrf.mxu0 }
 0x72e   :  { %v2838_v61 = vld [vmem:[%s3362_s7] sm:$0xff]  }
 0x72f   :  { %v792_v62 = vpop.f32.mrf.mxu0  ;;  %v835_v63 = vpop.f32.mrf.mxu1 }
 0x730   :  { %v844_v2 = vsel %vm224_vm2, %v835_v63, -inf }
 0x731   :  { %v2664_v3 = vpop.f32.mrf.mxu0  ;;  %845 = vmax.xlane.f32.xlu1 %v844_v2  ;;  %v2669_v4 = vpop.f32.mrf.mxu1  ;;  %v2840_v2 = vld [vmem:[%s3358_s3 + $0x20] sm:$0xff]  }
 0x733   :  { %v838_v5 = vpop.f32.mrf.mxu1 }
 0x735   :  { %v2670_v7 = vpop.f32.mrf.mxu1 }
 0x736   :  { %v2842_v7 = vld [vmem:[%s3357_s2 + $0x28] sm:$0xff]  }
 0x7b6   :  { %v843_v8 = vpop.xlane.xlu0 %842 }
 0x7b7   :  { %v847_v9 = vsub.f32 %v789_v59, %v843_v8 }
 0x7b9   :  { %v849_v10 = vmul.f32 1.442695, %v847_v9 }
 0x7ba   :  { %v846_v11 = vpop.xlane.xlu1 %845 }
 0x7bb   :  { %2866 = vpow2.f32 %v849_v10  ;;  %v848_v13 = vsub.f32 %v835_v63, %v846_v11  ;;  %v2839_v63 = vld [vmem:[%s3358_s3 + $0x28] sm:$0xff]   ;;  %v2843_v11 = vld [vmem:[%s3357_s2 + $0x20] sm:$0xff]  }
 0x7bd   :  { %v851_v14 = vmul.f32 1.442695, %v848_v13 }
 0x7bf   :  { %2868 = vpow2.f32 %v851_v14 }
 0x7c8   :  { %v2867_v15 = vpop.eup %2866 }
 0x7c9   :  { %v853_v16 = vsel %vm224_vm2, %v2867_v15, 0.0 }
 0x7ca   :  { %854 = vadd.xlane.f32.xlu0 %v853_v16 }
 0x7cc   :  { %v2869_v17 = vpop.eup %2868 }
 0x7cd   :  { %v856_v18 = vsel %vm224_vm2, %v2869_v17, 0.0 }
 0x7ce   :  { %857 = vadd.xlane.f32.xlu1 %v856_v18 }
 0x853   :  { %v855_v19 = vpop.xlane.xlu0 %854 }
 0x854   :  { %2870 = vrcp.f32 %v855_v19 }
 0x857   :  { %v858_v20 = vpop.xlane.xlu1 %857 }
 0x858   :  { %2872 = vrcp.f32 %v858_v20 }
 0x861   :  { %v2871_v21 = vpop.eup %2870 }
 0x862   :  { %v861_v22 = vmul.f32 %v2871_v21, %v2867_v15 }
 0x864   :  { %v863_v23 = vpack.c.bf16 %v861_v22, %v861_v22 }
 0x865   :  { %v2873_v24 = vpop.eup %2872 }
 0x866   :  { %2674 = vmatmul.mubr.msk.bf16.vlgmr.msra.gmra.mxu0 %vm224_vm2, %v863_v23  ;;  %v862_v25 = vmul.f32 %v2873_v24, %v2869_v17 }
 0x867   :  { %2691 = vmatpush3.msk.msra.mxu0 %vm545_vm6, %v3098_v26 }
 0x868   :  { %v864_v27 = vpack.c.bf16 %v862_v25, %v862_v25  ;;  %2701 = vmatprep.subr.bf16.mxu0 %v2936_v1 }
 0x86a   :  { %2680 = vmatmul.mubr.msk.bf16.vlgmr.msra.gmra.mxu1 %vm224_vm2, %v864_v27 }
 0x86b   :  { %2684 = vmatpush3.msra.mxu1 %v3068_v55 }
 0x86c   :  { %2685 = vmatprep.subr.mxu1 %v3079_v0 }
 0x86d   :  { %2686 = vmatpush3.msra.mxu1 %v3079_v0 }
 0x86e   :  { %2695 = vmatprep.subr.bf16.mxu1 %v2936_v1 }
 0x926   :  { %v902_v28 = vpop.f32.mrf.mxu0 }
 0x927   :  { %2687 = vmatprep.mubr.msk.f32.mxu1 %vm434_vm4, %v902_v28 }
 0x928   :  { %v2675_v29 = vpop.f32.mrf.mxu0 }
 0x92a   :  { %v905_v30 = vpop.f32.mrf.mxu0  ;;  %v945_v32 = vpop.f32.mrf.mxu1 }
 0x92b   :  { %2688 = vmatmul.mubr.msk.f32.vlgmr.msra.gmra.mxu1 %vm434_vm4, %v945_v32 }
 0x92c   :  { %v2676_v33 = vpop.f32.mrf.mxu0  ;;  %v2681_v35 = vpop.f32.mrf.mxu1  ;;  %2697 = vmatprep.mubr.msk.bf16.mxu1 %vm2937_vm0, %v2936_v1  ;;  %2696 = vmatpush3.bf16.msra.mxu1 %v2841_v45 }
 0x92d   :  { %2707 = vmatprep.subr.bf16.mxu1 %v2936_v1 }
 0x92e   :  { %v948_v36 = vpop.f32.mrf.mxu1 }
 0x930   :  { %v2682_v37 = vpop.f32.mrf.mxu1 }
 0x9eb   :  { %v2689_v38 = vpop.f32.mrf.mxu1 }
 0x9ec   :  { %v1035_v39 = vsel %vm516_vm5, %v2689_v38, -inf }
 0x9ed   :  { %1036 = vmax.xlane.f32.xlu1 %v1035_v39  ;;  %v1023_v40 = vpop.f32.mrf.mxu1 }
 0x9ee   :  { %v1032_v41 = vsel %vm516_vm5, %v1023_v40, -inf }
 0x9ef   :  { %1033 = vmax.xlane.f32.xlu0 %v1032_v41 }
 0xa76   :  { %v1037_v42 = vpop.xlane.xlu1 %1036 }
 0xa77   :  { %v1039_v43 = vsub.f32 %v2689_v38, %v1037_v42 }
 0xa78   :  { %v1034_v44 = vpop.xlane.xlu0 %1033 }
 0xa79   :  { %v1042_v48 = vmul.f32 1.442695, %v1039_v43  ;;  %v1038_v49 = vsub.f32 %v1023_v40, %v1034_v44 }
 0xa7b   :  { %2874 = vpow2.f32 %v1042_v48  ;;  %v1040_v50 = vmul.f32 1.442695, %v1038_v49 }
 0xa7d   :  { %2876 = vpow2.f32 %v1040_v50 }
 0xa88   :  { %v2875_v51 = vpop.eup %2874 }
 0xa89   :  { %v1047_v52 = vsel %vm516_vm5, %v2875_v51, 0.0 }
 0xa8a   :  { %v2877_v53 = vpop.eup %2876  ;;  %1048 = vadd.xlane.f32.xlu1 %v1047_v52 }
 0xa8b   :  { %v1044_v54 = vsel %vm516_vm5, %v2877_v53, 0.0 }
 0xa8c   :  { %1045 = vadd.xlane.f32.xlu0 %v1044_v54 }
 0xb13   :  { %v1049_v56 = vpop.xlane.xlu1 %1048 }
 0xb14   :  { %2878 = vrcp.f32 %v1049_v56 }
 0xb15   :  { %v1046_v57 = vpop.xlane.xlu0 %1045 }
 0xb16   :  { %2880 = vrcp.f32 %v1046_v57 }
 0xb21   :  { %v2879_v58 = vpop.eup %2878 }
 0xb22   :  { %v1053_v62 = vmul.f32 %v2879_v58, %v2875_v51 }
 0xb23   :  { %v2881_v59 = vpop.eup %2880 }
 0xb24   :  { %v1052_v60 = vmul.f32 %v2881_v59, %v2877_v53 }
 0xb26   :  { %2692 = vmatprep.mubr.msk.f32.mxu0 %vm516_vm5, %v1052_v60 }
 0xb27   :  { %2693 = vmatmul.mubr.msk.f32.vlgmr.msra.gmra.mxu0 %vm516_vm5, %v1053_v62 }
 0xb28   :  { %2702 = vmatpush3.bf16.msra.mxu0 %v2838_v61  ;;  %2703 = vmatprep.mubr.msk.bf16.mxu0 %vm2937_vm0, %v2936_v1 }
 0xb29   :  { %2715 = vmatprep.subr.bf16.mxu0 %v2936_v1 }
 0xb2b   :  { %2704 = vmatmul.mubr.msk.bf16.vlgmr.msra.gmra.mxu0 %vm434_vm4, %v626_v47 }
 0xb2c   :  { %2716 = vmatpush3.bf16.msra.mxu0 %v2839_v63  ;;  %2719 = vmatprep.mubr.msk.bf16.mxu0 %vm2937_vm0, %v2936_v1 }
 0xb2d   :  { %2717 = vmatprep.subr.bf16.mxu0 %v2936_v1 }
 0xb30   :  { %2718 = vmatpush3.bf16.msra.mxu0 %v2840_v2 }
 0xb31   :  { %2729 = vmatprep.subr.bf16.mxu0 %v2936_v1 }
 0xb33   :  { %2720 = vmatmul.mubr.msk.bf16.vlgmr.msra.gmra.mxu0 %vm53_vm1, %v3008_v6 }
 0xb34   :  { %2731 = vmatprep.mubr.msk.bf16.mxu0 %vm2937_vm0, %v2936_v1 }
 0xbe7   :  { %v2694_v46 = vpop.f32.mrf.mxu0 }
 0xbe8   :  { %v1136_v3 = vmul.f32 %v2694_v46, %v945_v32 }
 0xbe9   :  { %v1126_v47 = vpop.f32.mrf.mxu0 }
 0xbea   :  { %v1135_v4 = vmul.f32 %v1126_v47, %v902_v28 }
 0xbeb   :  { %v3207_v5 = vpop.f32.mrf.mxu0 }
 0xbec   :  { %v1137_v8 = vpack.c.bf16 %v1136_v3, %v1135_v4 }
 0xbed   :  { %v2705_v9 = vpop.f32.mrf.mxu0 }
 0xbee   :  { %2698 = vmatmul.mubr.msk.bf16.vlgmr.msra.gmra.mxu1 %vm434_vm4, %v1137_v8 }
 0xbef   :  { %v3213_v10 = vpop.f32.mrf.mxu0  ;;  %2708 = vmatpush3.bf16.msra.mxu1 %v2842_v7  ;;  %2711 = vmatprep.mubr.msk.bf16.mxu1 %vm2937_vm0, %v2936_v1 }
 0xbf0   :  { %2709 = vmatprep.subr.bf16.mxu1 %v2936_v1 }
 0xbf1   :  { %v2706_v13 = vpop.f32.mrf.mxu0 }
 0xbf3   :  { %2710 = vmatpush3.bf16.msra.mxu1 %v2843_v11  ;;  %v1350_v14 = vpop.f32.mrf.mxu0 }
 0xbf4   :  { %v1359_v15 = vpack.c.bf16 %v1350_v14, %v1350_v14  ;;  %2723 = vmatprep.subr.bf16.mxu1 %v2936_v1 }
 0xbf5   :  { %v2721_v16 = vpop.f32.mrf.mxu0 }
 0xbf6   :  { %2712 = vmatmul.mubr.msk.bf16.vlgmr.msra.gmra.mxu1 %vm53_vm1, %v3029_v12  ;;  %v1365_v17 = vsel %vm224_vm2, %v1359_v15, 0 }
 0xbf7   :  { %v1353_v18 = vpop.f32.mrf.mxu0  ;;  %2724 = vmatpush3.bf16.xpose.msra.mxu1 %v1365_v17  ;;  %2725 = vmatprep.mubr.msk.bf16.mxu1 %vm2937_vm0, %v2936_v1 }
 0xbf8   :  { %v1360_v19 = vpack.c.bf16 %v1353_v18, %v1353_v18  ;;  %2735 = vmatprep.subr.bf16.mxu1 %v2936_v1 }
 0xbf9   :  { %v2722_v20 = vpop.f32.mrf.mxu0 }
 0xbfa   :  { %v1411_v21 = vsel %vm224_vm2, %v1360_v19, 0 }
 0xbfb   :  { %2730 = vmatpush3.bf16.xpose.msra.mxu0 %v1411_v21 }
 0xbfc   :  { %2741 = vmatprep.subr.bf16.mxu0 %v2936_v1 }
 0xcae   :  { %v3230_v22 = vpop.f32.mrf.mxu1 }
 0xcb0   :  { %v2699_v23 = vpop.f32.mrf.mxu1 }
 0xcb2   :  { %v3232_v24 = vpop.f32.mrf.mxu1 }
 0xcb4   :  { %v2700_v25 = vpop.f32.mrf.mxu1 }
 0xcb6   :  { %v1292_v27 = vpop.f32.mrf.mxu1 }
 0xcb7   :  { %v1357_v28 = vpack.c.bf16 %v1292_v27, %v1292_v27 }
 0xcb8   :  { %v2713_v29 = vpop.f32.mrf.mxu1 }
 0xcb9   :  { %2726 = vmatmul.mubr.msk.bf16.vlgmr.msra.gmra.mxu1 %vm224_vm2, %v1357_v28 }
 0xcba   :  { %2736 = vmatpush3.bf16.msra.mxu1 %v3048_v31  ;;  %v1295_v30 = vpop.f32.mrf.mxu1  ;;  %2737 = vmatprep.mubr.msk.bf16.mxu1 %vm2937_vm0, %v2936_v1 }
 0xcbb   :  { %v1358_v32 = vpack.c.bf16 %v1295_v30, %v1295_v30  ;;  %2747 = vmatprep.subr.mxu1 %v3068_v55 }
 0xcbc   :  { %v2714_v33 = vpop.f32.mrf.mxu1 }
 0xcbd   :  { %2732 = vmatmul.mubr.msk.bf16.vlgmr.msra.gmra.mxu0 %vm224_vm2, %v1358_v32 }
 0xcbe   :  { %2742 = vmatpush3.bf16.msra.mxu0 %v3054_v34  ;;  %2743 = vmatprep.mubr.msk.bf16.mxu0 %vm2937_vm0, %v2936_v1 }
 0xcbf   :  { %2754 = vmatprep.subr.msk.mxu0 %vm545_vm6, %v3098_v26 }
 0xd79   :  { %v1401_v35 = vpop.f32.mrf.mxu1 }
 0xd7a   :  { %v1453_v36 = vsel %vm224_vm2, %v1401_v35, -inf }
 0xd7b   :  { %1454 = vmax.xlane.f32.xlu0 %v1453_v36  ;;  %v2727_v37 = vpop.f32.mrf.mxu1 }
 0xd7d   :  { %v1404_v38 = vpop.f32.mrf.mxu1  ;;  %v1447_v39 = vpop.f32.mrf.mxu0 }
 0xd7e   :  { %v1456_v40 = vsel %vm224_vm2, %v1447_v39, -inf }
 0xd7f   :  { %v2728_v41 = vpop.f32.mrf.mxu1  ;;  %1457 = vmax.xlane.f32.xlu1 %v1456_v40  ;;  %v2733_v42 = vpop.f32.mrf.mxu0  ;;  %v2846_v40 = vld [vmem:[%s3357_s2 + $0x38] sm:$0xff]  }
 0xd80   :  { %v2848_v41 = vld [vmem:[%s3357_s2 + $0x30] sm:$0xff]  }
 0xd81   :  { %v1450_v43 = vpop.f32.mrf.mxu0 }
 0xd83   :  { %v2734_v44 = vpop.f32.mrf.mxu0 }
 0xe04   :  { %v1455_v48 = vpop.xlane.xlu0 %1454 }
 0xe05   :  { %v1459_v49 = vsub.f32 %v1401_v35, %v1455_v48 }
 0xe07   :  { %v1461_v50 = vmul.f32 1.442695, %v1459_v49  ;;  %v2845_v49 = vld [vmem:[%s3358_s3 + $0x38] sm:$0xff]  }
 0xe08   :  { %v1458_v51 = vpop.xlane.xlu1 %1457 }
 0xe09   :  { %2882 = vpow2.f32 %v1461_v50  ;;  %v1460_v52 = vsub.f32 %v1447_v39, %v1458_v51  ;;  %v2844_v39 = vld [vmem:[%s3362_s7 + $0x10] sm:$0xff]  }
 0xe0a   :  { %v2847_v51 = vld [vmem:[%s3358_s3 + $0x30] sm:$0xff]  }
 0xe0b   :  { %v1463_v53 = vmul.f32 1.442695, %v1460_v52 }
 0xe0d   :  { %2884 = vpow2.f32 %v1463_v53 }
 0xe16   :  { %v2883_v54 = vpop.eup %2882 }
 0xe17   :  { %v1465_v56 = vsel %vm224_vm2, %v2883_v54, 0.0 }
 0xe18   :  { %1466 = vadd.xlane.f32.xlu0 %v1465_v56  ;;  %v1235_v56 = vadd.f32 %v3207_v5, %v3230_v22 }
 0xe1a   :  { %v2885_v57 = vpop.eup %2884 }
 0xe1b   :  { %v1468_v58 = vsel %vm224_vm2, %v2885_v57, 0.0 }
 0xe1c   :  { %1469 = vadd.xlane.f32.xlu1 %v1468_v58 }
 0xea1   :  { %v1467_v59 = vpop.xlane.xlu0 %1466 }
 0xea2   :  { %2886 = vrcp.f32 %v1467_v59 }
 0xea5   :  { %v1470_v60 = vpop.xlane.xlu1 %1469 }
 0xea6   :  { %2888 = vrcp.f32 %v1470_v60  ;;  %v1238_v60 = vadd.f32 %v3213_v10, %v3232_v24 }
 0xeaf   :  { %v2887_v61 = vpop.eup %2886 }
 0xeb0   :  { %v1473_v62 = vmul.f32 %v2887_v61, %v2883_v54 }
 0xeb2   :  { %v1475_v63 = vpack.c.bf16 %v1473_v62, %v1473_v62 }
 0xeb3   :  { %v2889_v2 = vpop.eup %2888 }
 0xeb4   :  { %2738 = vmatmul.mubr.msk.bf16.vlgmr.msra.gmra.mxu1 %vm224_vm2, %v1475_v63  ;;  %v1474_v45 = vmul.f32 %v2889_v2, %v2885_v57 }
 0xeb5   :  { %2748 = vmatpush3.msra.mxu1 %v3068_v55 }
 0xeb6   :  { %v1476_v46 = vpack.c.bf16 %v1474_v45, %v1474_v45  ;;  %2749 = vmatprep.subr.mxu1 %v3079_v0 }
 0xeb7   :  { %2750 = vmatpush3.msra.mxu1 %v3079_v0 }
 0xeb8   :  { %2744 = vmatmul.mubr.msk.bf16.vlgmr.msra.gmra.mxu0 %vm224_vm2, %v1476_v46  ;;  %2759 = vmatprep.subr.bf16.mxu1 %v2936_v1 }
 0xeb9   :  { %2755 = vmatpush3.msk.msra.mxu0 %vm545_vm6, %v3098_v26 }
 0xeba   :  { %2765 = vmatprep.subr.bf16.mxu0 %v2936_v1 }
 0xf74   :  { %v1514_v47 = vpop.f32.mrf.mxu1 }
 0xf75   :  { %2751 = vmatprep.mubr.msk.f32.mxu1 %vm434_vm4, %v1514_v47 }
 0xf76   :  { %v2739_v3 = vpop.f32.mrf.mxu1 }
 0xf78   :  { %v1517_v4 = vpop.f32.mrf.mxu1  ;;  %v1557_v7 = vpop.f32.mrf.mxu0 }
 0xf79   :  { %2752 = vmatmul.mubr.msk.f32.vlgmr.msra.gmra.mxu1 %vm434_vm4, %v1557_v7 }
 0xf7a   :  { %v2740_v8 = vpop.f32.mrf.mxu1  ;;  %v2745_v9 = vpop.f32.mrf.mxu0  ;;  %2761 = vmatprep.mubr.msk.bf16.mxu1 %vm2937_vm0, %v2936_v1  ;;  %2760 = vmatpush3.bf16.msra.mxu1 %v2844_v39 }
 0xf7b   :  { %2773 = vmatprep.subr.bf16.mxu1 %v2936_v1 }
 0xf7c   :  { %v1560_v11 = vpop.f32.mrf.mxu0 }
 0xf7e   :  { %v2746_v13 = vpop.f32.mrf.mxu0 }
0x1039   :  { %v2753_v14 = vpop.f32.mrf.mxu1 }
0x103a   :  { %v1647_v15 = vsel %vm516_vm5, %v2753_v14, -inf }
0x103b   :  { %1648 = vmax.xlane.f32.xlu1 %v1647_v15  ;;  %v1635_v16 = vpop.f32.mrf.mxu1 }
0x103c   :  { %v1644_v17 = vsel %vm516_vm5, %v1635_v16, -inf }
0x103d   :  { %1645 = vmax.xlane.f32.xlu0 %v1644_v17 }
0x10c4   :  { %v1649_v18 = vpop.xlane.xlu1 %1648 }
0x10c5   :  { %v1651_v19 = vsub.f32 %v2753_v14, %v1649_v18 }
0x10c6   :  { %v1646_v20 = vpop.xlane.xlu0 %1645 }
0x10c7   :  { %v1654_v21 = vmul.f32 1.442695, %v1651_v19  ;;  %v1650_v23 = vsub.f32 %v1635_v16, %v1646_v20 }
0x10c9   :  { %2890 = vpow2.f32 %v1654_v21  ;;  %v1652_v25 = vmul.f32 1.442695, %v1650_v23 }
0x10cb   :  { %2892 = vpow2.f32 %v1652_v25 }
0x10d6   :  { %v2891_v27 = vpop.eup %2890 }
0x10d7   :  { %v1659_v28 = vsel %vm516_vm5, %v2891_v27, 0.0 }
0x10d8   :  { %v2893_v29 = vpop.eup %2892  ;;  %1660 = vadd.xlane.f32.xlu1 %v1659_v28 }
0x10d9   :  { %v1656_v30 = vsel %vm516_vm5, %v2893_v29, 0.0 }
0x10da   :  { %1657 = vadd.xlane.f32.xlu0 %v1656_v30 }
0x1161   :  { %v1661_v32 = vpop.xlane.xlu1 %1660 }
0x1162   :  { %2894 = vrcp.f32 %v1661_v32 }
0x1163   :  { %v1658_v33 = vpop.xlane.xlu0 %1657 }
0x1164   :  { %2896 = vrcp.f32 %v1658_v33 }
0x116f   :  { %v2895_v35 = vpop.eup %2894 }
0x1170   :  { %v1665_v38 = vmul.f32 %v2895_v35, %v2891_v27 }
0x1171   :  { %v2897_v36 = vpop.eup %2896 }
0x1172   :  { %v1664_v37 = vmul.f32 %v2897_v36, %v2893_v29 }
0x1174   :  { %2756 = vmatprep.mubr.msk.f32.mxu0 %vm516_vm5, %v1664_v37 }
0x1175   :  { %2757 = vmatmul.mubr.msk.f32.vlgmr.msra.gmra.mxu0 %vm516_vm5, %v1665_v38 }
0x1176   :  { %2769 = vmatprep.mubr.msk.bf16.mxu0 %vm2937_vm0, %v2936_v1  ;;  %2766 = vmatpush3.bf16.msra.mxu0 %v2846_v40 }
0x1177   :  { %2767 = vmatprep.subr.bf16.mxu0 %v2936_v1 }
0x117a   :  { %2768 = vmatpush3.bf16.msra.mxu0 %v2848_v41 }
0x117b   :  { %2781 = vmatprep.subr.bf16.mxu0 %v2936_v1 }
0x117d   :  { %2770 = vmatmul.mubr.msk.bf16.vlgmr.msra.gmra.mxu0 %vm53_vm1, %v3029_v12 }
0x117e   :  { %2783 = vmatprep.mubr.msk.bf16.mxu0 %vm2937_vm0, %v2936_v1 }
0x1235   :  { %v2758_v42 = vpop.f32.mrf.mxu0 }
0x1236   :  { %v1748_v44 = vmul.f32 %v2758_v42, %v1557_v7 }
0x1237   :  { %v1738_v43 = vpop.f32.mrf.mxu0 }
0x1238   :  { %v1747_v48 = vmul.f32 %v1738_v43, %v1514_v47 }
0x123a   :  { %v1749_v50 = vpack.c.bf16 %v1748_v44, %v1747_v48 }
0x123c   :  { %2762 = vmatmul.mubr.msk.bf16.vlgmr.msra.gmra.mxu1 %vm434_vm4, %v1749_v50 }
0x123d   :  { %2774 = vmatpush3.bf16.msra.mxu1 %v2845_v49  ;;  %2777 = vmatprep.mubr.msk.bf16.mxu1 %vm2937_vm0, %v2936_v1  ;;  %v1856_v12 = vpop.f32.mrf.mxu0 }
0x123e   :  { %2775 = vmatprep.subr.bf16.mxu1 %v2936_v1  ;;  %v1921_v22 = vpack.c.bf16 %v1856_v12, %v1856_v12 }
0x123f   :  { %v2771_v52 = vpop.f32.mrf.mxu0 }
0x1241   :  { %2776 = vmatpush3.bf16.msra.mxu1 %v2847_v51  ;;  %v1859_v53 = vpop.f32.mrf.mxu0 }
0x1242   :  { %2787 = vmatprep.subr.bf16.mxu1 %v2936_v1  ;;  %v1922_v10 = vpack.c.bf16 %v1859_v53, %v1859_v53 }
0x1243   :  { %v2772_v54 = vpop.f32.mrf.mxu0 }
0x1244   :  { %2778 = vmatmul.mubr.msk.bf16.vlgmr.msra.gmra.mxu1 %vm53_vm1, %v3008_v6 }
0x1245   :  { %2789 = vmatprep.mubr.msk.bf16.mxu1 %vm2937_vm0, %v2936_v1 }
0x12fc   :  { %v1796_v57 = vpop.f32.mrf.mxu1 }
0x12fd   :  { %v3303_v58 = vadd.f32 %v1796_v57, %v1235_v56 }
0x12fe   :  { %v2763_v59 = vpop.f32.mrf.mxu1 }
0x1300   :  { %v1799_v61 = vpop.f32.mrf.mxu1 }
0x1301   :  { %v3307_v62 = vadd.f32 %v1799_v61, %v1238_v60 }
0x1302   :  { %v2764_v6 = vpop.f32.mrf.mxu1 }
0x1304   :  { %v1914_v63 = vpop.f32.mrf.mxu1 }
0x1305   :  { %v1923_v2 = vpack.c.bf16 %v1914_v63, %v1914_v63 }
0x1306   :  { %v2779_v45 = vpop.f32.mrf.mxu1 }
0x1307   :  { %v1929_v46 = vsel %vm224_vm2, %v1923_v2, 0 }
0x1308   :  { %v1917_v47 = vpop.f32.mrf.mxu1  ;;  %2782 = vmatpush3.bf16.xpose.msra.mxu0 %v1929_v46 }
0x1309   :  { %v1924_v3 = vpack.c.bf16 %v1917_v47, %v1917_v47  ;;  %2793 = vmatprep.subr.bf16.mxu0 %v2936_v1  ;;  %v2849_v47 = vld [vmem:[%s3362_s7 + $0x18] sm:$0xff]   ;;  %s2914_s7 = scalar_lea.vmem %s2377_s6, 256 }
0x130a   :  { %v2780_v5 = vpop.f32.mrf.mxu1  ;;  %p2915_p0 = scmp.ne.s32.totalorder %s2377_s6, %s2914_s7  ;;  %p2920_p2 = scmp.lt.s32.totalorder %s2914_s7, %s2914_s7 }
0x130b   :  { %v1975_v4 = vsel %vm224_vm2, %v1924_v3, 0 }
0x130c   :  { %2788 = vmatpush3.bf16.xpose.msra.mxu1 %v1975_v4  ;;  %p2921_p3 = por %p2920_p2, %p2919_p1 }
0x130d   :  { %2799 = vmatprep.subr.bf16.mxu1 %v2936_v1 }
0x130e   :  { %p2922_p4 = pnand %p2921_p3, %p2915_p0 }
0x130f   :  { %2784 = vmatmul.mubr.msk.bf16.vlgmr.msra.gmra.mxu0 %vm224_vm2, %v1921_v22 }
0x1310   :  { %2794 = vmatpush3.bf16.msra.mxu0 %v3048_v31  ;;  %2795 = vmatprep.mubr.msk.bf16.mxu0 %vm2937_vm0, %v2936_v1 }
0x1311   :  { %2805 = vmatprep.subr.mxu0 %v3068_v55 }
0x1313   :  { %2790 = vmatmul.mubr.msk.bf16.vlgmr.msra.gmra.mxu1 %vm224_vm2, %v1922_v10 }
0x1314   :  { %2800 = vmatpush3.bf16.msra.mxu1 %v3054_v34  ;;  %2801 = vmatprep.mubr.msk.bf16.mxu1 %vm2937_vm0, %v2936_v1 }
0x1315   :  { %2812 = vmatprep.subr.msk.mxu1 %vm545_vm6, %v3098_v26 }
0x13cf   :  { %v1965_v24 = vpop.f32.mrf.mxu0 }
0x13d0   :  { %v2017_v7 = vsel %vm224_vm2, %v1965_v24, -inf }
0x13d1   :  { %2018 = vmax.xlane.f32.xlu0 %v2017_v7  ;;  %v2785_v31 = vpop.f32.mrf.mxu0 }
0x13d3   :  { %v1968_v8 = vpop.f32.mrf.mxu0  ;;  %v2011_v9 = vpop.f32.mrf.mxu1 }
0x13d4   :  { %v2020_v11 = vsel %vm224_vm2, %v2011_v9, -inf }
0x13d5   :  { %v2786_v13 = vpop.f32.mrf.mxu0  ;;  %2021 = vmax.xlane.f32.xlu1 %v2020_v11  ;;  %v2791_v14 = vpop.f32.mrf.mxu1 }
0x13d7   :  { %v2014_v15 = vpop.f32.mrf.mxu1 }
0x13d9   :  { %v2792_v34 = vpop.f32.mrf.mxu1 }
0x145a   :  { %v2019_v16 = vpop.xlane.xlu0 %2018 }
0x145b   :  { %v2023_v17 = vsub.f32 %v1965_v24, %v2019_v16 }
0x145d   :  { %v2025_v18 = vmul.f32 1.442695, %v2023_v17 }
0x145e   :  { %v2022_v19 = vpop.xlane.xlu1 %2021 }
0x145f   :  { %2898 = vpow2.f32 %v2025_v18  ;;  %v2024_v20 = vsub.f32 %v2011_v9, %v2022_v19 }
0x1461   :  { %v2027_v21 = vmul.f32 1.442695, %v2024_v20 }
0x1463   :  { %2900 = vpow2.f32 %v2027_v21 }
0x146c   :  { %v2899_v23 = vpop.eup %2898 }
0x146d   :  { %v2029_v25 = vsel %vm224_vm2, %v2899_v23, 0.0 }
0x146e   :  { %2030 = vadd.xlane.f32.xlu0 %v2029_v25 }
0x1470   :  { %v2901_v27 = vpop.eup %2900 }
0x1471   :  { %v2032_v28 = vsel %vm224_vm2, %v2901_v27, 0.0 }
0x1472   :  { %2033 = vadd.xlane.f32.xlu1 %v2032_v28 }
0x14f7   :  { %v2031_v29 = vpop.xlane.xlu0 %2030 }
0x14f8   :  { %2902 = vrcp.f32 %v2031_v29 }
0x14fb   :  { %v2034_v30 = vpop.xlane.xlu1 %2033 }
0x14fc   :  { %2904 = vrcp.f32 %v2034_v30 }
0x1505   :  { %v2903_v32 = vpop.eup %2902 }
0x1506   :  { %v2037_v33 = vmul.f32 %v2903_v32, %v2899_v23 }
0x1508   :  { %v2039_v35 = vpack.c.bf16 %v2037_v33, %v2037_v33 }
0x1509   :  { %v2905_v36 = vpop.eup %2904 }
0x150a   :  { %2796 = vmatmul.mubr.msk.bf16.vlgmr.msra.gmra.mxu0 %vm224_vm2, %v2039_v35  ;;  %v2038_v37 = vmul.f32 %v2905_v36, %v2901_v27 }
0x150b   :  { %2806 = vmatpush3.msra.mxu0 %v3068_v55 }
0x150c   :  { %v2040_v38 = vpack.c.bf16 %v2038_v37, %v2038_v37  ;;  %2807 = vmatprep.subr.mxu0 %v3079_v0 }
0x150d   :  { %2808 = vmatpush3.msra.mxu0 %v3079_v0 }
0x150e   :  { %2802 = vmatmul.mubr.msk.bf16.vlgmr.msra.gmra.mxu1 %vm224_vm2, %v2040_v38  ;;  %2817 = vmatprep.subr.bf16.mxu0 %v2936_v1 }
0x150f   :  { %2813 = vmatpush3.msk.msra.mxu1 %vm545_vm6, %v3098_v26 }
0x15ca   :  { %v2078_v39 = vpop.f32.mrf.mxu0 }
0x15cb   :  { %2809 = vmatprep.mubr.msk.f32.mxu0 %vm434_vm4, %v2078_v39 }
0x15cc   :  { %v2797_v40 = vpop.f32.mrf.mxu0 }
0x15ce   :  { %v2081_v41 = vpop.f32.mrf.mxu0  ;;  %v2121_v42 = vpop.f32.mrf.mxu1 }
0x15cf   :  { %2810 = vmatmul.mubr.msk.f32.vlgmr.msra.gmra.mxu0 %vm434_vm4, %v2121_v42 }
0x15d0   :  { %v2798_v55 = vpop.f32.mrf.mxu0  ;;  %v2803_v43 = vpop.f32.mrf.mxu1  ;;  %2819 = vmatprep.mubr.msk.bf16.mxu0 %vm2937_vm0, %v2936_v1  ;;  %2818 = vmatpush3.bf16.msra.mxu0 %v2849_v47 }
0x15d2   :  { %v2124_v0 = vpop.f32.mrf.mxu1 }
0x15d4   :  { %v2804_v44 = vpop.f32.mrf.mxu1 }
0x168f   :  { %v2811_v48 = vpop.f32.mrf.mxu0 }
0x1690   :  { %v2211_v49 = vsel %vm516_vm5, %v2811_v48, -inf }
0x1691   :  { %2212 = vmax.xlane.f32.xlu1 %v2211_v49  ;;  %v2199_v26 = vpop.f32.mrf.mxu0 }
0x1692   :  { %v2208_v50 = vsel %vm516_vm5, %v2199_v26, -inf }
0x1693   :  { %2209 = vmax.xlane.f32.xlu0 %v2208_v50 }
0x171a   :  { %v2213_v51 = vpop.xlane.xlu1 %2212 }
0x171b   :  { %v2215_v12 = vsub.f32 %v2811_v48, %v2213_v51 }
0x171c   :  { %v2210_v52 = vpop.xlane.xlu0 %2209 }
0x171d   :  { %v2218_v53 = vmul.f32 1.442695, %v2215_v12  ;;  %v2214_v54 = vsub.f32 %v2199_v26, %v2210_v52 }
0x171f   :  { %2906 = vpow2.f32 %v2218_v53  ;;  %v2216_v56 = vmul.f32 1.442695, %v2214_v54 }
0x1721   :  { %2908 = vpow2.f32 %v2216_v56 }
0x172c   :  { %v2907_v57 = vpop.eup %2906 }
0x172d   :  { %v2223_v1 = vsel %vm516_vm5, %v2907_v57, 0.0 }
0x172e   :  { %v2909_v59 = vpop.eup %2908  ;;  %2224 = vadd.xlane.f32.xlu1 %v2223_v1 }
0x172f   :  { %v2220_v60 = vsel %vm516_vm5, %v2909_v59, 0.0 }
0x1730   :  { %2221 = vadd.xlane.f32.xlu0 %v2220_v60 }
0x17b7   :  { %v2225_v61 = vpop.xlane.xlu1 %2224 }
0x17b8   :  { %2910 = vrcp.f32 %v2225_v61 }
0x17b9   :  { %v2222_v6 = vpop.xlane.xlu0 %2221 }
0x17ba   :  { %2912 = vrcp.f32 %v2222_v6 }
0x17c5   :  { %v2911_v63 = vpop.eup %2910 }
0x17c6   :  { %v2229_v46 = vmul.f32 %v2911_v63, %v2907_v57 }
0x17c7   :  { %v2913_v2 = vpop.eup %2912 }
0x17c8   :  { %v2228_v45 = vmul.f32 %v2913_v2, %v2909_v59 }
0x17ca   :  { %2814 = vmatprep.mubr.msk.f32.mxu1 %vm516_vm5, %v2228_v45 }
0x17cb   :  { %2815 = vmatmul.mubr.msk.f32.vlgmr.msra.gmra.mxu1 %vm516_vm5, %v2229_v46 }
0x188b   :  { %v2816_v3 = vpop.f32.mrf.mxu1 }
0x188c   :  { %v2312_v22 = vmul.f32 %v2816_v3, %v2121_v42 }
0x188d   :  { %v2302_v5 = vpop.f32.mrf.mxu1 }
0x188e   :  { %v2311_v4 = vmul.f32 %v2302_v5, %v2078_v39 }
0x1890   :  { %v2313_v10 = vpack.c.bf16 %v2312_v22, %v2311_v4 }
0x1892   :  { %2820 = vmatmul.mubr.msk.bf16.vlgmr.msra.gmra.mxu0 %vm434_vm4, %v2313_v10 }
0x1952   :  { %v2360_v24 = vpop.f32.mrf.mxu0 }
0x1953   :  { %v2367_v7 = vadd.f32 %v2360_v24, %v3303_v58 }
0x1954   :  { %v2821_v31 = vpop.f32.mrf.mxu0 }
0x1955   :  { %2369 = vst [vmem:[#allocation2] sm:$0xff] %v2367_v7 }
0x1956   :  { %v2363_v8 = vpop.f32.mrf.mxu0 }
0x1957   :  { %v2368_v9 = vadd.f32 %v2363_v8, %v3307_v62 }
0x1958   :  { %v2822_v11 = vpop.f32.mrf.mxu0 }
0x1959   :  { %2370 = vst [vmem:[#allocation2 + $0x8] sm:$0xff] %v2368_v9 }
0x195a   :  { %2925 = shalt.err (!%p2922_p4)
}
0x195b   :  { %s2939_s9 = smov 128   ;;  %s2940_s10 = smov 8  }
0x195c   :  { %2382 = dma.vmem_to_hbm [thread:$0]  %s2377_s6, 256, %s3363_s8, [#allocation3], %s2939_s9, %s2939_s9, %s2940_s10  }
0x195d   :  { %2934 = dma.done.wait [#allocation3], 256  }
0x195e   :  { %2935 = vsyncadd [#allocation3], 4294967040 }
0x195f   :  { %2386 = vsyncpa [#allocation3], 1 }

</bundles_post_ra>
